<compile_context>
chip_gen: v7x
topology: tpu7x:2x2x1
jax: 0.10.0
libtpu: 0.0.40
codegen_flags: <defaults>
</compile_context>

<pallas_src>
import functools

import jax
import jax.numpy as jnp
from jax.experimental import pallas as pl
from jax.experimental.pallas import tpu as pltpu

GIN_EPS = 0.3      # GINConv eps
BN_EPS = 1e-5      # BatchNorm1d eps


def _round_up(x, m):
    return (x + m - 1) // m * m


def _vmem_usable_bytes():
    """Generation-aware VMEM ceiling with headroom for compiler scratch."""
    cap = 128 << 20
    try:
        info = pltpu.get_tpu_info()
        for name in ("vmem_capacity_bytes", "vmem_size_bytes", "vmem_bytes"):
            v = getattr(info, name, None)
            if v:
                cap = int(v)
                break
    except Exception:
        pass
    # leave >= 8 MiB / ~18% for compiler-internal scratch:
    #   128 MiB parts (v5e/v6e) -> ~105 MiB usable; v7x 64 MiB -> ~52 MiB.
    return max(min(int(cap * 0.82), cap - (8 << 20)), 16 << 20)


_VMEM_USABLE = _vmem_usable_bytes()


def _gin_fused_kernel(x_hbm, adj_in, w1_ref, b1_ref, gamma_ref, beta_ref,
                      w2_ref, b2_ref, pool_ref, wout_ref, bout_ref, mask_ref,
                      out_ref, x_sc, agg_sc, load_sem, adj_sc=None, *,
                      n_valid, tk, adj_resident):
    l = pl.program_id(0)           # layer index
    k = pl.program_id(1)           # node-row chunk index
    n_layers = pl.num_programs(0)
    n_k = pl.num_programs(1)

    # --- one-time loads: node features always; whole int8 adjacency when it
    #     fits VMEM (then the dominant HBM stream is paid exactly once). ------
    @pl.when(jnp.logical_and(l == 0, k == 0))
    def _():
        x_cp = pltpu.make_async_copy(x_hbm, x_sc, load_sem.at[0])
        x_cp.start()
        if adj_resident:
            a_cp = pltpu.make_async_copy(adj_in, adj_sc, load_sem.at[1])
            a_cp.start()
            a_cp.wait()
        x_cp.wait()

    # --- aggregation, one row chunk per grid step ----------------------------
    # agg[rows] = (1 + eps) * x[rows] + A[rows, :] @ x   (MXU, bf16 x bf16 -> f32)
    rows = pl.multiple_of(k * tk, 128)
    if adj_resident:
        a_rows = adj_sc[pl.ds(rows, tk), :]      # resident int8, sublane slice
    else:
        a_rows = adj_in[...]                     # streamed (tk, n_pad) int8 slab
    x_all = x_sc[...].astype(jnp.bfloat16)
    agg_sc[pl.ds(rows, tk), :] = (
        (1.0 + GIN_EPS) * x_sc[pl.ds(rows, tk), :]
        + jnp.dot(a_rows.astype(jnp.bfloat16), x_all,
                  preferred_element_type=jnp.float32))

    # --- end of a layer: Linear -> BatchNorm -> Tanh -> Linear -> Tanh -------
    @pl.when(k == n_k - 1)
    def _():
        h = agg_sc[...]
        z1 = jnp.dot(h.astype(jnp.bfloat16), w1_ref[0],
                     preferred_element_type=jnp.float32) + b1_ref[0]

        if n_valid == z1.shape[0]:
            # no padded node rows: plain batch statistics
            mean = jnp.mean(z1, axis=0, keepdims=True)
            c = z1 - mean
            var = jnp.mean(c * c, axis=0, keepdims=True)            # biased var
        else:
            # padded node rows must not contribute to the batch statistics
            msk = mask_ref[...]                                     # (n_pad, 1)
            inv_n = 1.0 / float(n_valid)
            mean = jnp.sum(z1 * msk, axis=0, keepdims=True) * inv_n
            c = (z1 - mean) * msk
            var = jnp.sum(c * c, axis=0, keepdims=True) * inv_n     # biased var

        z1n = c * jax.lax.rsqrt(var + BN_EPS) * gamma_ref[0] + beta_ref[0]
        a = jnp.tanh(z1n)
        z2 = jnp.dot(a.astype(jnp.bfloat16), w2_ref[0],
                     preferred_element_type=jnp.float32) + b2_ref[0]
        x_sc[...] = jnp.tanh(z2)

        # last layer: fused readout straight out of VMEM-resident features
        @pl.when(l == n_layers - 1)
        def _():
            pooled = jnp.dot(pool_ref[...], x_sc[...],
                             preferred_element_type=jnp.float32)
            logits = jnp.dot(pooled, wout_ref[...],
                             preferred_element_type=jnp.float32) + bout_ref[...]
            out_ref[...] = jax.nn.sigmoid(logits)


def _pad2(a, rows, cols):
    """Zero-pad a 2-D array to (rows, cols), f32."""
    return jnp.zeros((rows, cols), jnp.float32).at[:a.shape[0], :a.shape[1]].set(a)


@functools.partial(jax.jit, static_argnames=("num_graphs",))
def gin_forward(x, edge_index, batch, params, head, num_graphs):
    n, in_size = x.shape
    num_layers = len(params)
    hidden = params[0][4].shape[0]          # w2 is (hidden, hidden)
    w_out, b_out = head
    out_size = w_out.shape[1]

    # ---- padded static shapes ------------------------------------------------
    f_pad = _round_up(max(in_size, hidden), 128)      # feature/hidden lanes
    out_pad = _round_up(out_size, 128)                # readout lanes
    n128 = _round_up(n, 128)

    # ---- generation-aware adjacency placement --------------------------------
    fixed_bytes = (
        2 * n128 * f_pad * 4                  # x_sc + agg_sc (f32, resident)
        + 2 * n128 * f_pad * 2                # per-step bf16 cast of x
        + 4 * f_pad * f_pad * 2               # w1/w2 bf16 blocks (double-buffered)
        + 8 * f_pad * 4                       # b1/gamma/beta/b2 blocks
        + 2 * num_graphs * n128 * 4           # pool
        + 2 * (f_pad * out_pad + out_pad + n128 + num_graphs * out_pad) * 4
    )
    adj_budget = _VMEM_USABLE - fixed_bytes - (8 << 20)

    chunk = 1024                              # max row-chunk for the bf16 cast temp
    adj_resident = (n128 * n128 + 2 * n128 * min(n128, chunk)) <= adj_budget
    if adj_resident:
        # whole int8 adjacency stays in VMEM; k axis only chunks the cast + dot
        tk = n128
        if n128 > chunk:
            tk = 128
            for cand in range(chunk, 127, -128):
                if n128 % cand == 0:
                    tk = cand
                    break
        n_pad = n128
    else:
        # stream (tk, n_pad) int8 row slabs once per layer:
        # 2 int8 slab buffers + bf16 cast temp ~= 4 * tk * n_pad bytes
        per_slab = max(adj_budget // 4, n128 * 128)
        tk = min(n128, max(128, (per_slab // n128) // 128 * 128))
        n_pad = _round_up(n, tk)
    n_k = n_pad // tk

    # ---- dense operands -------------------------------------------------------
    # adjacency built directly in int8: A[dst, src] = multiplicity of (src -> dst)
    src, dst = edge_index[0], edge_index[1]
    adj = (jnp.zeros((n_pad, n_pad), jnp.int8)
           .at[dst, src].add(jnp.ones(src.shape, jnp.int8)))

    # pooling matrix for global_add_pool (padded nodes match no graph)
    batch_p = jnp.pad(batch, (0, n_pad - n), constant_values=-1)
    pool = (batch_p[None, :] == jnp.arange(num_graphs)[:, None]).astype(jnp.float32)

    # BatchNorm row-validity mask (precomputed once, not rebuilt per layer)
    row_mask = (jnp.arange(n_pad) < n).astype(jnp.float32).reshape(n_pad, 1)

    x_p = _pad2(x, n_pad, f_pad)

    # stack per-layer weights, zero-padded to lane-dense shapes; w1/w2 in bf16
    w1s, b1s, gs, bts, w2s, b2s = [], [], [], [], [], []
    for (w1, b1, gamma, beta, w2, b2) in params:
        w1s.append(_pad2(w1, f_pad, f_pad))
        b1s.append(_pad2(b1, 1, f_pad))
        gs.append(_pad2(gamma, 1, f_pad))
        bts.append(_pad2(beta, 1, f_pad))
        w2s.append(_pad2(w2, f_pad, f_pad))
        b2s.append(_pad2(b2, 1, f_pad))
    w1_all = jnp.stack(w1s).astype(jnp.bfloat16)          # (L, f_pad, f_pad)
    w2_all = jnp.stack(w2s).astype(jnp.bfloat16)          # (L, f_pad, f_pad)
    b1_all = jnp.stack(b1s).reshape(num_layers, 1, f_pad)
    g_all = jnp.stack(gs).reshape(num_layers, 1, f_pad)
    bt_all = jnp.stack(bts).reshape(num_layers, 1, f_pad)
    b2_all = jnp.stack(b2s).reshape(num_layers, 1, f_pad)

    wout_p = _pad2(w_out, f_pad, out_pad)
    bout_p = _pad2(b_out, 1, out_pad)

    # ---- VMEM budget & cost estimate ------------------------------------------
    if adj_resident:
        adj_vmem = n_pad * n_pad + 2 * n_pad * tk          # resident int8 + bf16 chunk
    else:
        adj_vmem = 4 * n_pad * tk                          # 2 int8 slabs + bf16 chunk
    vmem_need = (
        2 * n_pad * f_pad * 4 + 2 * n_pad * f_pad * 2 + adj_vmem
        + 4 * f_pad * f_pad * 2 + 8 * f_pad * 4
        + 2 * num_graphs * n_pad * 4
        + 2 * (f_pad * out_pad + out_pad + n_pad + num_graphs * out_pad) * 4
    )
    vmem_limit = int(min(max(vmem_need + (8 << 20), 32 << 20), _VMEM_USABLE))

    flops = int(
        num_layers * (2 * n_pad * n_pad * f_pad + 4 * n_pad * f_pad * f_pad)
        + 2 * num_graphs * n_pad * f_pad
        + 2 * num_graphs * f_pad * out_pad
    )
    transcendentals = int(num_layers * 2 * n_pad * f_pad + num_graphs * out_pad)
    bytes_accessed = int(
        n_pad * n_pad * (1 if adj_resident else num_layers)   # int8 adjacency
        + n_pad * f_pad * 4
        + num_layers * (2 * f_pad * f_pad * 2 + 4 * f_pad * 4)
        + num_graphs * n_pad * 4
        + (f_pad * out_pad + out_pad + n_pad + num_graphs * out_pad) * 4
    )

    # ---- fused pallas_call ------------------------------------------------------
    adj_spec = (pl.BlockSpec(memory_space=pl.ANY) if adj_resident
                else pl.BlockSpec((tk, n_pad), lambda l, k: (k, 0)))

    scratch = [
        pltpu.VMEM((n_pad, f_pad), jnp.float32),   # x (resident across layers)
        pltpu.VMEM((n_pad, f_pad), jnp.float32),   # aggregation buffer
        pltpu.SemaphoreType.DMA((2,)),             # one-time load semaphores
    ]
    if adj_resident:
        scratch.append(pltpu.VMEM((n_pad, n_pad), jnp.int8))   # resident adjacency

    grid_spec = pltpu.PrefetchScalarGridSpec(
        num_scalar_prefetch=0,
        grid=(num_layers, n_k),
        in_specs=[
            pl.BlockSpec(memory_space=pl.ANY),                        # x (manual DMA)
            adj_spec,                                                 # adjacency
            pl.BlockSpec((1, f_pad, f_pad), lambda l, k: (l, 0, 0)),  # w1[l] (bf16)
            pl.BlockSpec((1, 1, f_pad), lambda l, k: (l, 0, 0)),      # b1[l]
            pl.BlockSpec((1, 1, f_pad), lambda l, k: (l, 0, 0)),      # gamma[l]
            pl.BlockSpec((1, 1, f_pad), lambda l, k: (l, 0, 0)),      # beta[l]
            pl.BlockSpec((1, f_pad, f_pad), lambda l, k: (l, 0, 0)),  # w2[l] (bf16)
            pl.BlockSpec((1, 1, f_pad), lambda l, k: (l, 0, 0)),      # b2[l]
            pl.BlockSpec((num_graphs, n_pad), lambda l, k: (0, 0)),   # pool
            pl.BlockSpec((f_pad, out_pad), lambda l, k: (0, 0)),      # w_out
            pl.BlockSpec((1, out_pad), lambda l, k: (0, 0)),          # b_out
            pl.BlockSpec((n_pad, 1), lambda l, k: (0, 0)),            # BN row mask
        ],
        out_specs=pl.BlockSpec((num_graphs, out_pad), lambda l, k: (0, 0)),
        scratch_shapes=scratch,
    )

    out_padded = pl.pallas_call(
        functools.partial(_gin_fused_kernel, n_valid=n, tk=tk,
                          adj_resident=adj_resident),
        out_shape=jax.ShapeDtypeStruct((num_graphs, out_pad), jnp.float32),
        grid_spec=grid_spec,
        compiler_params=pltpu.CompilerParams(
            # Both axes carry state (layer chain; full agg needed before the MLP),
            # so neither axis can be "parallel".
            dimension_semantics=("arbitrary", "arbitrary"),
            vmem_limit_bytes=vmem_limit,
        ),
        cost_estimate=pl.CostEstimate(
            flops=flops,
            transcendentals=transcendentals,
            bytes_accessed=bytes_accessed,
        ),
    )(x_p, adj, w1_all, b1_all, g_all, bt_all, w2_all, b2_all,
      pool, wout_p, bout_p, row_mask)

    return out_padded[:, :out_size]


def init_linear(key, fan_in, fan_out):
    """Deterministic torch.nn.Linear-style init: U(-1/sqrt(fan_in), 1/sqrt(fan_in))."""
    kw, kb = jax.random.split(key)
    bound = 1.0 / jnp.sqrt(jnp.float32(fan_in))
    w = jax.random.uniform(kw, (fan_in, fan_out), jnp.float32, -bound, bound)
    b = jax.random.uniform(kb, (1, fan_out), jnp.float32, -bound, bound)
    return w, b


def init_gin_params(key, input_size, hidden_size, output_size, num_layers):
    params = []
    in_size = input_size
    for _ in range(num_layers):
        key, k1, k2 = jax.random.split(key, 3)
        w1, b1 = init_linear(k1, in_size, hidden_size)
        w2, b2 = init_linear(k2, hidden_size, hidden_size)
        gamma = jnp.ones((1, hidden_size), jnp.float32)   # BatchNorm1d weight
        beta = jnp.zeros((1, hidden_size), jnp.float32)   # BatchNorm1d bias
        params.append((w1, b1, gamma, beta, w2, b2))
        in_size = hidden_size
    key, kout = jax.random.split(key)
    w_out, b_out = init_linear(kout, hidden_size, output_size)
    # TODO(synk): self.mlp (MLP([hidden, 2*hidden, output])) is never used in
    # forward(), so it is not materialized here.
    return params, (w_out, b_out)


if __name__ == "__main__":
    # small deterministic problem
    num_nodes = 32
    input_size = 16
    hidden_size = 32
    output_size = 8
    num_layers = 3
    num_graphs = 2
    num_edges = 64

    key = jax.random.PRNGKey(0)
    k_x, k_e, k_p = jax.random.split(key, 3)

    x = jax.random.normal(k_x, (num_nodes, input_size), jnp.float32)
    edge_index = jax.random.randint(k_e, (2, num_edges), 0, num_nodes, jnp.int32)
    # first half of nodes -> graph 0, second half -> graph 1
    batch = jnp.concatenate([
        jnp.zeros((num_nodes // 2,), jnp.int32),
        jnp.ones((num_nodes - num_nodes // 2,), jnp.int32),
    ])

    params, head = init_gin_params(k_p, input_size, hidden_size, output_size,
                                   num_layers)

    out = gin_forward(x, edge_index, batch, params, head, num_graphs)
    out = jax.block_until_ready(out)
    assert out.shape == (num_graphs, output_size)
    assert bool(jnp.all(jnp.isfinite(out)))
    print("KERNEL_OK")
</pallas_src>

<mosaic_0001>
module attributes {stable_mosaic.version = 11 : i64} {
  func.func @_gin_fused_kernel(%arg0: i32, %arg1: i32, %arg2: memref<128x128xf32, #tpu.memory_space<any>>, %arg3: memref<128x128xi8, #tpu.memory_space<any>>, %arg4: memref<1x128x128xbf16, #tpu.memory_space<vmem>>, %arg5: memref<1x1x128xf32, #tpu.memory_space<vmem>>, %arg6: memref<1x1x128xf32, #tpu.memory_space<vmem>>, %arg7: memref<1x1x128xf32, #tpu.memory_space<vmem>>, %arg8: memref<1x128x128xbf16, #tpu.memory_space<vmem>>, %arg9: memref<1x1x128xf32, #tpu.memory_space<vmem>>, %arg10: memref<2x128xf32, #tpu.memory_space<vmem>>, %arg11: memref<128x128xf32, #tpu.memory_space<vmem>>, %arg12: memref<1x128xf32, #tpu.memory_space<vmem>>, %arg13: memref<128x1xf32, #tpu.memory_space<vmem>>, %arg14: memref<2x128xf32, #tpu.memory_space<vmem>>, %arg15: memref<128x128xf32, #tpu.memory_space<vmem>>, %arg16: memref<128x128xf32, #tpu.memory_space<vmem>>, %arg17: memref<2x!tpu.dma_semaphore, #tpu.memory_space<semaphore_mem>>, %arg18: memref<128x128xi8, #tpu.memory_space<vmem>>) attributes {dimension_semantics = [#tpu.dimension_semantics<arbitrary>, #tpu.dimension_semantics<arbitrary>], iteration_bounds = array<i64: 3, 1>, scalar_prefetch = 0 : i64, scratch_operands = 4 : i64, tpu.core_type = #tpu.core_type<tc>, window_params = [{}, {}, {transform_indices = @transform_2, window_bounds = array<i64: 1, 128, 128>}, {transform_indices = @transform_3, window_bounds = array<i64: 1, 1, 128>}, {transform_indices = @transform_4, window_bounds = array<i64: 1, 1, 128>}, {transform_indices = @transform_5, window_bounds = array<i64: 1, 1, 128>}, {transform_indices = @transform_6, window_bounds = array<i64: 1, 128, 128>}, {transform_indices = @transform_7, window_bounds = array<i64: 1, 1, 128>}, {pipeline_mode = #tpu.pipeline_mode<synchronous>, transform_indices = @transform_8, window_bounds = array<i64: 2, 128>}, {pipeline_mode = #tpu.pipeline_mode<synchronous>, transform_indices = @transform_9, window_bounds = array<i64: 128, 128>}, {pipeline_mode = #tpu.pipeline_mode<synchronous>, transform_indices = @transform_10, window_bounds = array<i64: 1, 128>}, {pipeline_mode = #tpu.pipeline_mode<synchronous>, transform_indices = @transform_11, window_bounds = array<i64: 128, 1>}, {pipeline_mode = #tpu.pipeline_mode<synchronous>, transform_indices = @transform_12, window_bounds = array<i64: 2, 128>}]} {
    %c0_i32 = arith.constant 0 : i32
    %0 = arith.cmpi eq, %arg0, %c0_i32 : i32
    %c0_i32_0 = arith.constant 0 : i32
    %1 = arith.cmpi eq, %arg1, %c0_i32_0 : i32
    %2 = arith.andi %0, %1 : i1
    %3 = arith.extui %2 : i1 to i32
    %c0_i32_1 = arith.constant 0 : i32
    %4 = arith.cmpi ne, %3, %c0_i32_1 : i32
    scf.if %4 {
      %c0_i32_9 = arith.constant 0 : i32
      %23 = tpu.memref_slice %arg17[%c0_i32_9] : memref<2x!tpu.dma_semaphore, #tpu.memory_space<semaphore_mem>> -> memref<1x!tpu.dma_semaphore, #tpu.memory_space<semaphore_mem>>
      %24 = tpu.memref_squeeze %23 : memref<1x!tpu.dma_semaphore, #tpu.memory_space<semaphore_mem>> -> memref<!tpu.dma_semaphore, #tpu.memory_space<semaphore_mem>>
      tpu.enqueue_dma source(%arg2 : memref<128x128xf32, #tpu.memory_space<any>>) target(%arg15 : memref<128x128xf32, #tpu.memory_space<vmem>>) target_semaphore(%24 : memref<!tpu.dma_semaphore, #tpu.memory_space<semaphore_mem>>)
      %c1_i32 = arith.constant 1 : i32
      %25 = tpu.memref_slice %arg17[%c1_i32] : memref<2x!tpu.dma_semaphore, #tpu.memory_space<semaphore_mem>> -> memref<1x!tpu.dma_semaphore, #tpu.memory_space<semaphore_mem>>
      %26 = tpu.memref_squeeze %25 : memref<1x!tpu.dma_semaphore, #tpu.memory_space<semaphore_mem>> -> memref<!tpu.dma_semaphore, #tpu.memory_space<semaphore_mem>>
      tpu.enqueue_dma source(%arg3 : memref<128x128xi8, #tpu.memory_space<any>>) target(%arg18 : memref<128x128xi8, #tpu.memory_space<vmem>>) target_semaphore(%26 : memref<!tpu.dma_semaphore, #tpu.memory_space<semaphore_mem>>)
      %c1_i32_10 = arith.constant 1 : i32
      %27 = tpu.memref_slice %arg17[%c1_i32_10] : memref<2x!tpu.dma_semaphore, #tpu.memory_space<semaphore_mem>> -> memref<1x!tpu.dma_semaphore, #tpu.memory_space<semaphore_mem>>
      %28 = tpu.memref_squeeze %27 : memref<1x!tpu.dma_semaphore, #tpu.memory_space<semaphore_mem>> -> memref<!tpu.dma_semaphore, #tpu.memory_space<semaphore_mem>>
      tpu.wait_dma2 semaphore(%28 : memref<!tpu.dma_semaphore, #tpu.memory_space<semaphore_mem>>) src(%arg3 : memref<128x128xi8, #tpu.memory_space<any>>) dst(%arg18 : memref<128x128xi8, #tpu.memory_space<vmem>>)
      %c0_i32_11 = arith.constant 0 : i32
      %29 = tpu.memref_slice %arg17[%c0_i32_11] : memref<2x!tpu.dma_semaphore, #tpu.memory_space<semaphore_mem>> -> memref<1x!tpu.dma_semaphore, #tpu.memory_space<semaphore_mem>>
      %30 = tpu.memref_squeeze %29 : memref<1x!tpu.dma_semaphore, #tpu.memory_space<semaphore_mem>> -> memref<!tpu.dma_semaphore, #tpu.memory_space<semaphore_mem>>
      tpu.wait_dma2 semaphore(%30 : memref<!tpu.dma_semaphore, #tpu.memory_space<semaphore_mem>>) src(%arg2 : memref<128x128xf32, #tpu.memory_space<any>>) dst(%arg15 : memref<128x128xf32, #tpu.memory_space<vmem>>)
    } else {
    }
    %c128_i32 = arith.constant 128 : i32
    %5 = arith.muli %arg1, %c128_i32 : i32
    %6 = tpu.assume_multiple %5, 128 : i32
    %7 = arith.index_cast %6 : i32 to index
    %c0 = arith.constant 0 : index
    %8 = vector.load %arg18[%7, %c0] : memref<128x128xi8, #tpu.memory_space<vmem>>, vector<128x128xi8>
    %c0_2 = arith.constant 0 : index
    %c0_3 = arith.constant 0 : index
    %9 = vector.load %arg15[%c0_2, %c0_3] : memref<128x128xf32, #tpu.memory_space<vmem>>, vector<128x128xf32>
    %10 = arith.truncf %9 : vector<128x128xf32> to vector<128x128xbf16>
    %11 = arith.index_cast %6 : i32 to index
    %c0_4 = arith.constant 0 : index
    %12 = vector.load %arg15[%11, %c0_4] : memref<128x128xf32, #tpu.memory_space<vmem>>, vector<128x128xf32>
    %cst = arith.constant 1.300000e+00 : f32
    %13 = vector.broadcast %cst : f32 to vector<128x128xf32>
    %14 = arith.mulf %13, %12 : vector<128x128xf32>
    %15 = arith.sitofp %8 : vector<128x128xi8> to vector<128x128xbf16>
    %cst_5 = arith.constant dense<0.000000e+00> : vector<128x128xf32>
    %16 = tpu.matmul %15, %10, %cst_5 {dimension_numbers = #tpu.dot_dimension_numbers<[1], [0], [0], [1], [0, 0, 1, 1], [], []>} : vector<128x128xbf16>, vector<128x128xbf16>, vector<128x128xf32> -> vector<128x128xf32>
    %17 = arith.addf %14, %16 : vector<128x128xf32>
    %18 = arith.index_cast %6 : i32 to index
    %c0_6 = arith.constant 0 : index
    %19 = vector.load %arg16[%18, %c0_6] : memref<128x128xf32, #tpu.memory_space<vmem>>, vector<128x128xf32>
    tpu.vector_store %arg16[%18, %c0_6], %17 {strides = array<i32>} : memref<128x128xf32, #tpu.memory_space<vmem>>, vector<128x128xf32>,
    %c0_i32_7 = arith.constant 0 : i32
    %20 = arith.cmpi eq, %arg1, %c0_i32_7 : i32
    %21 = arith.extui %20 : i1 to i32
    %c0_i32_8 = arith.constant 0 : i32
    %22 = arith.cmpi ne, %21, %c0_i32_8 : i32
    scf.if %22 {
      %c0_9 = arith.constant 0 : index
      %c0_10 = arith.constant 0 : index
      %23 = vector.load %arg16[%c0_9, %c0_10] : memref<128x128xf32, #tpu.memory_space<vmem>>, vector<128x128xf32>
      %24 = arith.truncf %23 : vector<128x128xf32> to vector<128x128xbf16>
      %c0_11 = arith.constant 0 : index
      %c0_12 = arith.constant 0 : index
      %c0_13 = arith.constant 0 : index
      %25 = vector.load %arg4[%c0_11, %c0_12, %c0_13] : memref<1x128x128xbf16, #tpu.memory_space<vmem>>, vector<1x128x128xbf16>
      %26 = vector.shape_cast %25 : vector<1x128x128xbf16> to vector<128x128xbf16>
      %cst_14 = arith.constant dense<0.000000e+00> : vector<128x128xf32>
      %27 = tpu.matmul %24, %26, %cst_14 {dimension_numbers = #tpu.dot_dimension_numbers<[1], [0], [0], [1], [0, 0, 1, 1], [], []>} : vector<128x128xbf16>, vector<128x128xbf16>, vector<128x128xf32> -> vector<128x128xf32>
      %c0_15 = arith.constant 0 : index
      %c0_16 = arith.constant 0 : index
      %c0_17 = arith.constant 0 : index
      %28 = vector.load %arg5[%c0_15, %c0_16, %c0_17] : memref<1x1x128xf32, #tpu.memory_space<vmem>>, vector<1x1x128xf32>
      %29 = vector.shape_cast %28 : vector<1x1x128xf32> to vector<1x128xf32>
      %30 = vector.broadcast %29 : vector<1x128xf32> to vector<128x128xf32>
      %31 = arith.addf %27, %30 : vector<128x128xf32>
      %c0_18 = arith.constant 0 : index
      %c0_19 = arith.constant 0 : index
      %32 = vector.load %arg13[%c0_18, %c0_19] : memref<128x1xf32, #tpu.memory_space<vmem>>, vector<128x1xf32>
      %33 = vector.broadcast %32 : vector<128x1xf32> to vector<128x128xf32>
      %34 = arith.mulf %31, %33 : vector<128x128xf32>
      %cst_20 = arith.constant dense<0.000000e+00> : vector<128xf32>
      %35 = vector.multi_reduction <add>, %34, %cst_20 [0] : vector<128x128xf32> to vector<128xf32>
      %36 = vector.shape_cast %35 : vector<128xf32> to vector<1x128xf32>
      %cst_21 = arith.constant 3.125000e-02 : f32
      %37 = vector.broadcast %cst_21 : f32 to vector<1x128xf32>
      %38 = arith.mulf %36, %37 : vector<1x128xf32>
      %39 = vector.broadcast %38 : vector<1x128xf32> to vector<128x128xf32>
      %40 = arith.subf %31, %39 : vector<128x128xf32>
      %41 = vector.broadcast %32 : vector<128x1xf32> to vector<128x128xf32>
      %42 = arith.mulf %40, %41 : vector<128x128xf32>
      %43 = arith.mulf %42, %42 : vector<128x128xf32>
      %cst_22 = arith.constant dense<0.000000e+00> : vector<128xf32>
      %44 = vector.multi_reduction <add>, %43, %cst_22 [0] : vector<128x128xf32> to vector<128xf32>
      %45 = vector.shape_cast %44 : vector<128xf32> to vector<1x128xf32>
      %cst_23 = arith.constant 3.125000e-02 : f32
      %46 = vector.broadcast %cst_23 : f32 to vector<1x128xf32>
      %47 = arith.mulf %45, %46 : vector<1x128xf32>
      %cst_24 = arith.constant 9.99999974E-6 : f32
      %48 = vector.broadcast %cst_24 : f32 to vector<1x128xf32>
      %49 = arith.addf %47, %48 : vector<1x128xf32>
      %50 = math.rsqrt %49 : vector<1x128xf32>
      %51 = vector.broadcast %50 : vector<1x128xf32> to vector<128x128xf32>
      %52 = arith.mulf %42, %51 : vector<128x128xf32>
      %c0_25 = arith.constant 0 : index
      %c0_26 = arith.constant 0 : index
      %c0_27 = arith.constant 0 : index
      %53 = vector.load %arg6[%c0_25, %c0_26, %c0_27] : memref<1x1x128xf32, #tpu.memory_space<vmem>>, vector<1x1x128xf32>
      %54 = vector.shape_cast %53 : vector<1x1x128xf32> to vector<1x128xf32>
      %55 = vector.broadcast %54 : vector<1x128xf32> to vector<128x128xf32>
      %56 = arith.mulf %52, %55 : vector<128x128xf32>
      %c0_28 = arith.constant 0 : index
      %c0_29 = arith.constant 0 : index
      %c0_30 = arith.constant 0 : index
      %57 = vector.load %arg7[%c0_28, %c0_29, %c0_30] : memref<1x1x128xf32, #tpu.memory_space<vmem>>, vector<1x1x128xf32>
      %58 = vector.shape_cast %57 : vector<1x1x128xf32> to vector<1x128xf32>
      %59 = vector.broadcast %58 : vector<1x128xf32> to vector<128x128xf32>
      %60 = arith.addf %56, %59 : vector<128x128xf32>
      %61 = math.tanh %60 : vector<128x128xf32>
      %62 = arith.truncf %61 : vector<128x128xf32> to vector<128x128xbf16>
      %c0_31 = arith.constant 0 : index
      %c0_32 = arith.constant 0 : index
      %c0_33 = arith.constant 0 : index
      %63 = vector.load %arg8[%c0_31, %c0_32, %c0_33] : memref<1x128x128xbf16, #tpu.memory_space<vmem>>, vector<1x128x128xbf16>
      %64 = vector.shape_cast %63 : vector<1x128x128xbf16> to vector<128x128xbf16>
      %cst_34 = arith.constant dense<0.000000e+00> : vector<128x128xf32>
      %65 = tpu.matmul %62, %64, %cst_34 {dimension_numbers = #tpu.dot_dimension_numbers<[1], [0], [0], [1], [0, 0, 1, 1], [], []>} : vector<128x128xbf16>, vector<128x128xbf16>, vector<128x128xf32> -> vector<128x128xf32>
      %c0_35 = arith.constant 0 : index
      %c0_36 = arith.constant 0 : index
      %c0_37 = arith.constant 0 : index
      %66 = vector.load %arg9[%c0_35, %c0_36, %c0_37] : memref<1x1x128xf32, #tpu.memory_space<vmem>>, vector<1x1x128xf32>
      %67 = vector.shape_cast %66 : vector<1x1x128xf32> to vector<1x128xf32>
      %68 = vector.broadcast %67 : vector<1x128xf32> to vector<128x128xf32>
      %69 = arith.addf %65, %68 : vector<128x128xf32>
      %70 = math.tanh %69 : vector<128x128xf32>
      %c0_38 = arith.constant 0 : index
      %c0_39 = arith.constant 0 : index
      %71 = vector.load %arg15[%c0_38, %c0_39] : memref<128x128xf32, #tpu.memory_space<vmem>>, vector<128x128xf32>
      tpu.vector_store %arg15[%c0_38, %c0_39], %70 {strides = array<i32>} : memref<128x128xf32, #tpu.memory_space<vmem>>, vector<128x128xf32>,
      %c2_i32 = arith.constant 2 : i32
      %72 = arith.cmpi eq, %arg0, %c2_i32 : i32
      %73 = arith.extui %72 : i1 to i32
      %c0_i32_40 = arith.constant 0 : i32
      %74 = arith.cmpi ne, %73, %c0_i32_40 : i32
      scf.if %74 {
        %c0_41 = arith.constant 0 : index
        %c0_42 = arith.constant 0 : index
        %75 = vector.load %arg10[%c0_41, %c0_42] : memref<2x128xf32, #tpu.memory_space<vmem>>, vector<2x128xf32>
        %c0_43 = arith.constant 0 : index
        %c0_44 = arith.constant 0 : index
        %76 = vector.load %arg15[%c0_43, %c0_44] : memref<128x128xf32, #tpu.memory_space<vmem>>, vector<128x128xf32>
        %cst_45 = arith.constant dense<0.000000e+00> : vector<2x128xf32>
        %77 = tpu.matmul %75, %76, %cst_45 {dimension_numbers = #tpu.dot_dimension_numbers<[1], [0], [0], [1], [0, 0, 1, 1], [], []>} : vector<2x128xf32>, vector<128x128xf32>, vector<2x128xf32> -> vector<2x128xf32>
        %c0_46 = arith.constant 0 : index
        %c0_47 = arith.constant 0 : index
        %78 = vector.load %arg11[%c0_46, %c0_47] : memref<128x128xf32, #tpu.memory_space<vmem>>, vector<128x128xf32>
        %cst_48 = arith.constant dense<0.000000e+00> : vector<2x128xf32>
        %79 = tpu.matmul %77, %78, %cst_48 {dimension_numbers = #tpu.dot_dimension_numbers<[1], [0], [0], [1], [0, 0, 1, 1], [], []>} : vector<2x128xf32>, vector<128x128xf32>, vector<2x128xf32> -> vector<2x128xf32>
        %c0_49 = arith.constant 0 : index
        %c0_50 = arith.constant 0 : index
        %80 = vector.load %arg12[%c0_49, %c0_50] : memref<1x128xf32, #tpu.memory_space<vmem>>, vector<1x128xf32>
        %81 = vector.broadcast %80 : vector<1x128xf32> to vector<2x128xf32>
        %82 = arith.addf %79, %81 : vector<2x128xf32>
        %83 = arith.negf %82 : vector<2x128xf32>
        %84 = math.exp %83 : vector<2x128xf32>
        %cst_51 = arith.constant 1.000000e+00 : f32
        %85 = vector.broadcast %cst_51 : f32 to vector<2x128xf32>
        %86 = arith.addf %85, %84 : vector<2x128xf32>
        %87 = arith.divf %85, %86 : vector<2x128xf32>
        %c0_52 = arith.constant 0 : index
        %c0_53 = arith.constant 0 : index
        %88 = vector.load %arg14[%c0_52, %c0_53] : memref<2x128xf32, #tpu.memory_space<vmem>>, vector<2x128xf32>
        tpu.vector_store %arg14[%c0_52, %c0_53], %87 {strides = array<i32>} : memref<2x128xf32, #tpu.memory_space<vmem>>, vector<2x128xf32>,
      } else {
      }
    } else {
    }
    return
  }
  func.func @transform_2(%arg0: i32, %arg1: i32) -> (i32, i32, i32) {
    %c0_i32 = arith.constant 0 : i32
    %c0_i32_0 = arith.constant 0 : i32
    %c0_i32_1 = arith.constant 0 : i32
    return %arg0, %c0_i32, %c0_i32_0 : i32, i32, i32
  }
  func.func @transform_3(%arg0: i32, %arg1: i32) -> (i32, i32, i32) {
    %c0_i32 = arith.constant 0 : i32
    %c0_i32_0 = arith.constant 0 : i32
    %c0_i32_1 = arith.constant 0 : i32
    return %arg0, %c0_i32, %c0_i32_0 : i32, i32, i32
  }
  func.func @transform_4(%arg0: i32, %arg1: i32) -> (i32, i32, i32) {
    %c0_i32 = arith.constant 0 : i32
    %c0_i32_0 = arith.constant 0 : i32
    %c0_i32_1 = arith.constant 0 : i32
    return %arg0, %c0_i32, %c0_i32_0 : i32, i32, i32
  }
  func.func @transform_5(%arg0: i32, %arg1: i32) -> (i32, i32, i32) {
    %c0_i32 = arith.constant 0 : i32
    %c0_i32_0 = arith.constant 0 : i32
    %c0_i32_1 = arith.constant 0 : i32
    return %arg0, %c0_i32, %c0_i32_0 : i32, i32, i32
  }
  func.func @transform_6(%arg0: i32, %arg1: i32) -> (i32, i32, i32) {
    %c0_i32 = arith.constant 0 : i32
    %c0_i32_0 = arith.constant 0 : i32
    %c0_i32_1 = arith.constant 0 : i32
    return %arg0, %c0_i32, %c0_i32_0 : i32, i32, i32
  }
  func.func @transform_7(%arg0: i32, %arg1: i32) -> (i32, i32, i32) {
    %c0_i32 = arith.constant 0 : i32
    %c0_i32_0 = arith.constant 0 : i32
    %c0_i32_1 = arith.constant 0 : i32
    return %arg0, %c0_i32, %c0_i32_0 : i32, i32, i32
  }
  func.func @transform_8(%arg0: i32, %arg1: i32) -> (i32, i32) {
    %c0_i32 = arith.constant 0 : i32
    %c0_i32_0 = arith.constant 0 : i32
    %c0_i32_1 = arith.constant 0 : i32
    return %c0_i32, %c0_i32_0 : i32, i32
  }
  func.func @transform_9(%arg0: i32, %arg1: i32) -> (i32, i32) {
    %c0_i32 = arith.constant 0 : i32
    %c0_i32_0 = arith.constant 0 : i32
    %c0_i32_1 = arith.constant 0 : i32
    return %c0_i32, %c0_i32_0 : i32, i32
  }
  func.func @transform_10(%arg0: i32, %arg1: i32) -> (i32, i32) {
    %c0_i32 = arith.constant 0 : i32
    %c0_i32_0 = arith.constant 0 : i32
    %c0_i32_1 = arith.constant 0 : i32
    return %c0_i32, %c0_i32_0 : i32, i32
  }
  func.func @transform_11(%arg0: i32, %arg1: i32) -> (i32, i32) {
    %c0_i32 = arith.constant 0 : i32
    %c0_i32_0 = arith.constant 0 : i32
    %c0_i32_1 = arith.constant 0 : i32
    return %c0_i32, %c0_i32_0 : i32, i32
  }
  func.func @transform_12(%arg0: i32, %arg1: i32) -> (i32, i32) {
    %c0_i32 = arith.constant 0 : i32
    %c0_i32_0 = arith.constant 0 : i32
    %c0_i32_1 = arith.constant 0 : i32
    return %c0_i32, %c0_i32_0 : i32, i32
  }
}

</mosaic_0001>

<bundles_post_ra>
// kernel: gin_forward.1
= control target key start
LH: loop header
LB: loop body
LE: loop exit
PB: predicated region body
PF: predicated region fallthrough
CT: control target
= control target key end

     0   :  { %s2950_s0 = inlined_call_operand.vmem [shape: f32[128,128], index: 0, kind: input, shape index: {}]   ;;  %s2951_s1 = inlined_call_operand.vmem [shape: s8[128,128], index: 1, kind: input, shape index: {}]   ;;  %s2952_s2 = inlined_call_operand.vmem [shape: bf16[3,128,128], index: 2, kind: input, shape index: {}]   ;;  %s2953_s3 = inlined_call_operand.vmem [shape: f32[3,1,128], index: 3, kind: input, shape index: {}]   ;;  %s2954_s4 = inlined_call_operand.vmem [shape: f32[3,1,128], index: 4, kind: input, shape index: {}]   ;;  %s2955_s5 = inlined_call_operand.vmem [shape: f32[3,1,128], index: 5, kind: input, shape index: {}]   ;;  %s2956_s6 = inlined_call_operand.vmem [shape: bf16[3,128,128], index: 6, kind: input, shape index: {}]   ;;  %s2957_s7 = inlined_call_operand.vmem [shape: f32[3,1,128], index: 7, kind: input, shape index: {}]   ;;  %s2958_s8 = inlined_call_operand.vmem [shape: f32[2,128], index: 8, kind: input, shape index: {}]   ;;  %s2959_s9 = inlined_call_operand.vmem [shape: f32[128,128], index: 9, kind: input, shape index: {}]   ;;  %s2960_s10 = inlined_call_operand.vmem [shape: f32[1,128], index: 10, kind: input, shape index: {}]   ;;  %s2961_s11 = inlined_call_operand.vmem [shape: f32[128,1], index: 11, kind: input, shape index: {}]   ;;  %s2962_s12 = inlined_call_operand.hbm [shape: f32[2,128], index: 12, kind: output, shape index: {}]  }
   0x1   :  { %2965 = sst [smem:[#allocation15_spill]] %s2962_s12 }
   0x2   :  { %17 = vsyncpa [#allocation7], 0  ;;  %s2395_s21 = smov 0   ;;  %s2397_s22 = smov 0  }
   0x3   :  { %s2399_s23 = smov 0  }
   0x4 LB: > { %2966 = sst [smem:[#allocation13_spill]] %s2319_s22  ;;  %s35_s25 = sadd.s32 1, %s2319_s22  ;;  %s2323_s23 = sphi %s2399_s23, %s23_s23   ;;  %s2319_s22 = sphi %s2397_s22, %s2973_s22   ;;  %s2315_s21 = sphi %s2395_s21, %s2972_s21  }
   0x5   : > { %p37_p0 = scmp.ge.s32.totalorder %s35_s25, 3  ;;  %p1794_p1 = scmp.ge.s32.totalorder %s2323_s23, 1 }
   0x6   : > { %p364_p2 = scmp.lt.s32.totalorder %s2323_s23, 4 }
   0x7   : > { %s2975_s25 = smov (%p37_p0, %s35_s25), 0 }
   0x8   : > { %2967 = sst [smem:[#allocation14_spill]] %s2975_s25  ;;  %p365_p3 = pnand %p1794_p1, %p364_p2 }
   0x9   : > { %p414_p4 = scmp.lt.s32.totalorder (!%p365_p3), %s2315_s21, 2  ;;  %p437_p5 = scmp.eq.s32.totalorder (!%p365_p3), %s2315_s21, 0 }
   0xa   : > { %368 = sbr.rel (%p365_p3) target bundleno = 1400 (0x578), region = 60 }
  0x11   : > { %s2419_s26 = scalar_select %p414_p4, %s2315_s21, 2 }
  0x12   : > { %442 = sbr.rel (!%p437_p5) target bundleno = 35 (0x23), region = 64  ;;  %v475_v0 = vld [vmem:[%s2950_s0] sm:$0xff] (%p437_p5)  ;;  %v477_v1 = vld [vmem:[%s2950_s0 + $0x8] sm:$0xff] (%p437_p5)  ;;  %v479_v2 = vld [vmem:[%s2950_s0 + $0x10] sm:$0xff] (%p437_p5) }
  0x13   : > { %s1829_s27 = sshll.u32 %s2419_s26, 6  ;;  %s424_s18 = scalar_lea.vmem %s2954_s4, %s2419_s26  ;;  %476 = vst [vmem:[#allocation2] sm:$0xff] (%p437_p5), %v475_v0  ;;  %478 = vst [vmem:[#allocation2 + $0x8] sm:$0xff] (%p437_p5), %v477_v1  ;;  %v481_v3 = vld [vmem:[%s2950_s0 + $0x18] sm:$0xff] (%p437_p5)  ;;  %v483_v4 = vld [vmem:[%s2950_s0 + $0x20] sm:$0xff] (%p437_p5) }
  0x14   : > { %s2429_s15 = scalar_lea.vmem %s2952_s2, %s1829_s27  ;;  %s427_s24 = scalar_lea.vmem %s2955_s5, %s2419_s26  ;;  %480 = vst [vmem:[#allocation2 + $0x10] sm:$0xff] (%p437_p5), %v479_v2  ;;  %v485_v5 = vld [vmem:[%s2950_s0 + $0x28] sm:$0xff] (%p437_p5)  ;;  %482 = vst [vmem:[#allocation2 + $0x18] sm:$0xff] (%p437_p5), %v481_v3  ;;  %v487_v6 = vld [vmem:[%s2950_s0 + $0x30] sm:$0xff] (%p437_p5) }
  0x15   : > { %s2442_s12 = scalar_lea.vmem %s2956_s6, %s1829_s27  ;;  %s435_s30 = scalar_lea.vmem %s2957_s7, %s2419_s26  ;;  %484 = vst [vmem:[#allocation2 + $0x20] sm:$0xff] (%p437_p5), %v483_v4  ;;  %486 = vst [vmem:[#allocation2 + $0x28] sm:$0xff] (%p437_p5), %v485_v5  ;;  %v489_v7 = vld [vmem:[%s2950_s0 + $0x38] sm:$0xff] (%p437_p5)  ;;  %v491_v8 = vld [vmem:[%s2950_s0 + $0x40] sm:$0xff] (%p437_p5) }
  0x16   : > { %488 = vst [vmem:[#allocation2 + $0x30] sm:$0xff] (%p437_p5), %v487_v6  ;;  %490 = vst [vmem:[#allocation2 + $0x38] sm:$0xff] (%p437_p5), %v489_v7  ;;  %v493_v9 = vld [vmem:[%s2950_s0 + $0x48] sm:$0xff] (%p437_p5)  ;;  %v495_v10 = vld [vmem:[%s2950_s0 + $0x50] sm:$0xff] (%p437_p5) }
  0x17   : > { %492 = vst [vmem:[#allocation2 + $0x40] sm:$0xff] (%p437_p5), %v491_v8  ;;  %v497_v11 = vld [vmem:[%s2950_s0 + $0x58] sm:$0xff] (%p437_p5)  ;;  %494 = vst [vmem:[#allocation2 + $0x48] sm:$0xff] (%p437_p5), %v493_v9  ;;  %v499_v12 = vld [vmem:[%s2950_s0 + $0x60] sm:$0xff] (%p437_p5) }
  0x18   : > { %496 = vst [vmem:[#allocation2 + $0x50] sm:$0xff] (%p437_p5), %v495_v10  ;;  %498 = vst [vmem:[#allocation2 + $0x58] sm:$0xff] (%p437_p5), %v497_v11  ;;  %v501_v13 = vld [vmem:[%s2950_s0 + $0x68] sm:$0xff] (%p437_p5)  ;;  %v503_v14 = vld [vmem:[%s2950_s0 + $0x70] sm:$0xff] (%p437_p5) }
  0x19   : > { %500 = vst [vmem:[#allocation2 + $0x60] sm:$0xff] %v499_v12  ;;  %502 = vst [vmem:[#allocation2 + $0x68] sm:$0xff] %v501_v13  ;;  %v505_v15 = vld [vmem:[%s2950_s0 + $0x78] sm:$0xff] }
  0x1a   : > { %504 = vst [vmem:[#allocation2 + $0x70] sm:$0xff] %v503_v14  ;;  %506 = vst [vmem:[#allocation2 + $0x78] sm:$0xff] %v505_v15 }
  0x1b   : > { %514 = vsyncadd [#allocation4], 2048  ;;  %v548_v16 = vld [vmem:[%s2951_s1] sm:$0xff]  ;;  %v550_v17 = vld [vmem:[%s2951_s1 + $0x8] sm:$0xff] }
  0x1c   : > { %549 = vst [vmem:[#allocation5] sm:$0xff] %v548_v16  ;;  %551 = vst [vmem:[#allocation5 + $0x8] sm:$0xff] %v550_v17  ;;  %v552_v18 = vld [vmem:[%s2951_s1 + $0x10] sm:$0xff]  ;;  %v554_v19 = vld [vmem:[%s2951_s1 + $0x18] sm:$0xff] }
  0x1d   : > { %553 = vst [vmem:[#allocation5 + $0x10] sm:$0xff] %v552_v18  ;;  %555 = vst [vmem:[#allocation5 + $0x18] sm:$0xff] %v554_v19 }
  0x1e   : > { %563 = vsyncadd [#allocation4 + $0x1], 512 }
  0x1f   : > { %2305 = dma.done.wait [#allocation4 + $0x1], 512 }
  0x20   : > { %2306 = vsyncadd [#allocation4 + $0x1], 4294966784 }
  0x21   : > { %2307 = dma.done.wait [#allocation4], 2048 }
  0x22   : > { %2308 = vsyncadd [#allocation4], 4294965248 }
  0x23 PF: > { %v576_v29 = vld [vmem:[#allocation5] sm:$0xff]  ;;  %v2182_v34 = vld [vmem:[%s2429_s15 + $0x8] sm:$0xff]   ;;  %v2183_v38 = vld [vmem:[%s2429_s15 + $0x10] sm:$0xff]   ;;  %v2325_v2 = vmov 0   ;;  %s2968_s20 = scalar_lea.vmem %s2953_s3, %s2419_s26  ;;  %p1820_p6 = scmp.ne.s32.totalorder %s2315_s21, 2 }
  0x24   : > { %v2508_v20 = vld [vmem:[#allocation2] sm:$0xff]  ;;  %v2510_v21 = vld [vmem:[#allocation2 + $0x8] sm:$0xff]  ;;  %v637_v32 = vunpack.c.l.s8.bf16 %v576_v29  ;;  %v2184_v42 = vld [vmem:[%s2429_s15 + $0x18] sm:$0xff]   ;;  %v638_v53 = vunpack.c.h.s8.bf16 %v576_v29  ;;  %2179 = vset.pattern.permute.xlu0 %v2325_v2  ;;  %2180 = vset.pattern.permute.xlu1 %v2325_v2  ;;  %vm2327_vm0 = vmmov (!%p1820_p6), 0  }
  0x25   : > { %v2512_v22 = vld [vmem:[#allocation2 + $0x10] sm:$0xff]  ;;  %v596_v23 = vpack.c.bf16 %v2510_v21, %v2508_v20  ;;  %v2516_v24 = vld [vmem:[#allocation2 + $0x18] sm:$0xff]  ;;  %v2181_v33 = vld [vmem:[%s2429_s15] sm:$0xff]  }
  0x26   : > { %v597_v25 = vpack.c.bf16 %v2516_v24, %v2512_v22  ;;  %v2520_v26 = vld [vmem:[#allocation2 + $0x20] sm:$0xff]  ;;  %v2522_v27 = vld [vmem:[#allocation2 + $0x28] sm:$0xff]  ;;  %1930 = vmatprep.mubr.bf16.mxu0 %v637_v32  ;;  %1946 = vmatprep.subr.bf16.mxu1 %v2181_v33  ;;  %v2555_v48 = vld [vmem:[#allocation2 + $0x70] sm:$0xff]  ;;  %v623_v17 = vmul.f32 1.3, %v2512_v22 }
  0x27   : > { %1914 = vmatprep.subr.bf16.mxu0 %v596_v23  ;;  %v598_v28 = vpack.c.bf16 %v2522_v27, %v2520_v26  ;;  %v2526_v30 = vld [vmem:[#allocation2 + $0x30] sm:$0xff]  ;;  %v2528_v31 = vld [vmem:[#allocation2 + $0x38] sm:$0xff]  ;;  %1947 = vmatpush3.bf16.msra.mxu1 %v2181_v33  ;;  %v2185_v46 = vld [vmem:[%s2429_s15 + $0x20] sm:$0xff]   ;;  %v624_v18 = vmul.f32 1.3, %v2516_v24 }
  0x28   : > { %1915 = vmatpush3.bf16.msra.mxu0 %v596_v23  ;;  %v599_v35 = vpack.c.bf16 %v2528_v31, %v2526_v30  ;;  %v2534_v36 = vld [vmem:[#allocation2 + $0x40] sm:$0xff]  ;;  %v2536_v37 = vld [vmem:[#allocation2 + $0x48] sm:$0xff]  ;;  %1948 = vmatprep.subr.bf16.mxu1 %v2182_v34  ;;  %v2557_v49 = vld [vmem:[#allocation2 + $0x78] sm:$0xff]  ;;  %v621_v23 = vmul.f32 1.3, %v2508_v20 }
  0x29   : > { %1916 = vmatprep.subr.bf16.mxu0 %v597_v25  ;;  %v2539_v39 = vld [vmem:[#allocation2 + $0x50] sm:$0xff]  ;;  %v2541_v40 = vld [vmem:[#allocation2 + $0x58] sm:$0xff]  ;;  %v600_v41 = vpack.c.bf16 %v2536_v37, %v2534_v36  ;;  %v2186_v50 = vld [vmem:[%s2429_s15 + $0x28] sm:$0xff]   ;;  %v603_v51 = vpack.c.bf16 %v2557_v49, %v2555_v48  ;;  %v628_v22 = vmul.f32 1.3, %v2528_v31 }
  0x2a   : > { %v2546_v43 = vld [vmem:[#allocation2 + $0x60] sm:$0xff]  ;;  %v2548_v44 = vld [vmem:[#allocation2 + $0x68] sm:$0xff]  ;;  %v601_v45 = vpack.c.bf16 %v2541_v40, %v2539_v39  ;;  %v578_v55 = vld [vmem:[#allocation5 + $0x10] sm:$0xff]  ;;  %v625_v24 = vmul.f32 1.3, %v2520_v26 }
  0x2b   : > { %1949 = vmatpush3.bf16.msra.mxu1 %v2182_v34  ;;  %v602_v47 = vpack.c.bf16 %v2548_v44, %v2546_v43  ;;  %v577_v52 = vld [vmem:[#allocation5 + $0x8] sm:$0xff]  ;;  %v641_v57 = vunpack.c.l.s8.bf16 %v578_v55  ;;  %v579_v58 = vld [vmem:[#allocation5 + $0x18] sm:$0xff]  ;;  %v642_v59 = vunpack.c.h.s8.bf16 %v578_v55  ;;  %v2187_v62 = vld [vmem:[%s2429_s15 + $0x30] sm:$0xff]   ;;  %v626_v20 = vmul.f32 1.3, %v2522_v27 }
  0x2c   : > { %1917 = vmatpush3.bf16.msra.mxu0 %v597_v25  ;;  %1950 = vmatprep.subr.bf16.mxu1 %v2183_v38  ;;  %v639_v54 = vunpack.c.l.s8.bf16 %v577_v52  ;;  %v640_v56 = vunpack.c.h.s8.bf16 %v577_v52  ;;  %v643_v60 = vunpack.c.l.s8.bf16 %v579_v58  ;;  %v644_v61 = vunpack.c.h.s8.bf16 %v579_v58  ;;  %v2188_v63 = vld [vmem:[%s2429_s15 + $0x38] sm:$0xff]   ;;  %v970_v0 = vld [vmem:[%s2961_s11] sm:$0xff]  ;;  %v972_v1 = vld [vmem:[%s2961_s11 + $0x10] sm:$0xff] }
  0x2d   : > { %1918 = vmatprep.subr.bf16.mxu0 %v598_v28  ;;  %988 = vperm.xlu0 %2179, %v970_v0   ;;  %v971_v3 = vld [vmem:[%s2961_s11 + $0x8] sm:$0xff]  ;;  %v973_v4 = vld [vmem:[%s2961_s11 + $0x18] sm:$0xff]  ;;  %v974_v5 = vld [vmem:[%s2961_s11 + $0x20] sm:$0xff]  ;;  %v622_v25 = vmul.f32 1.3, %v2510_v21 }
  0x2e   : > { %998 = vperm.xlu1 %2180, %v972_v1   ;;  %v975_v6 = vld [vmem:[%s2961_s11 + $0x28] sm:$0xff]  ;;  %v976_v7 = vld [vmem:[%s2961_s11 + $0x30] sm:$0xff]  ;;  %v977_v8 = vld [vmem:[%s2961_s11 + $0x38] sm:$0xff]  ;;  %v632_v31 = vmul.f32 1.3, %v2541_v40 }
  0x2f   : > { %1951 = vmatpush3.bf16.msra.mxu1 %v2183_v38  ;;  %v978_v9 = vld [vmem:[%s2961_s11 + $0x40] sm:$0xff]  ;;  %v979_v10 = vld [vmem:[%s2961_s11 + $0x48] sm:$0xff]  ;;  %v980_v11 = vld [vmem:[%s2961_s11 + $0x50] sm:$0xff]  ;;  %v629_v26 = vmul.f32 1.3, %v2534_v36 }
  0x30   : > { %1919 = vmatpush3.bf16.msra.mxu0 %v598_v28  ;;  %1952 = vmatprep.subr.bf16.mxu1 %v2184_v42  ;;  %v981_v12 = vld [vmem:[%s2961_s11 + $0x58] sm:$0xff]  ;;  %v982_v13 = vld [vmem:[%s2961_s11 + $0x60] sm:$0xff]  ;;  %v983_v14 = vld [vmem:[%s2961_s11 + $0x68] sm:$0xff]  ;;  %v630_v27 = vmul.f32 1.3, %v2536_v37 }
  0x31   : > { %1920 = vmatprep.subr.bf16.mxu0 %v599_v35  ;;  %993 = vperm.xlu0 %2179, %v971_v3   ;;  %v984_v15 = vld [vmem:[%s2961_s11 + $0x70] sm:$0xff]  ;;  %v985_v16 = vld [vmem:[%s2961_s11 + $0x78] sm:$0xff]  ;;  %v636_v40 = vmul.f32 1.3, %v2557_v49  ;;  %v633_v36 = vmul.f32 1.3, %v2546_v43 }
  0x32   : > { %1003 = vperm.xlu1 %2180, %v973_v4   ;;  %v634_v37 = vmul.f32 1.3, %v2548_v44  ;;  %v2189_v49 = vld [vmem:[%s2442_s12] sm:$0xff]   ;;  %v2190_v43 = vld [vmem:[%s2442_s12 + $0x8] sm:$0xff]   ;;  %v2191_v44 = vld [vmem:[%s2442_s12 + $0x10] sm:$0xff]  }
  0x33   : > { %1953 = vmatpush3.bf16.msra.mxu1 %v2184_v42 }
  0x34   : > { %1921 = vmatpush3.bf16.msra.mxu0 %v599_v35  ;;  %1954 = vmatprep.subr.bf16.mxu1 %v2185_v46 }
  0x35   : > { %1922 = vmatprep.subr.bf16.mxu0 %v600_v41  ;;  %1008 = vperm.xlu0 %2179, %v974_v5  }
  0x36   : > { %1013 = vperm.xlu1 %2180, %v975_v6  }
  0x37   : > { %1955 = vmatpush3.bf16.msra.mxu1 %v2185_v46 }
  0x38   : > { %1923 = vmatpush3.bf16.msra.mxu0 %v600_v41  ;;  %1956 = vmatprep.subr.bf16.mxu1 %v2186_v50 }
  0x39   : > { %1924 = vmatprep.subr.bf16.mxu0 %v601_v45  ;;  %1018 = vperm.xlu0 %2179, %v976_v7  }
  0x3a   : > { %1023 = vperm.xlu1 %2180, %v977_v8  }
  0x3b   : > { %1957 = vmatpush3.bf16.msra.mxu1 %v2186_v50 }
  0x3c   : > { %1925 = vmatpush3.bf16.msra.mxu0 %v601_v45  ;;  %1958 = vmatprep.subr.bf16.mxu1 %v2187_v62  ;;  %v627_v45 = vmul.f32 1.3, %v2526_v30  ;;  %v631_v30 = vmul.f32 1.3, %v2539_v39  ;;  %v635_v39 = vmul.f32 1.3, %v2555_v48 }
  0x3d   : > { %1926 = vmatprep.subr.bf16.mxu0 %v602_v47  ;;  %1028 = vperm.xlu0 %2179, %v978_v9  }
  0x3e   : > { %1033 = vperm.xlu1 %2180, %v979_v10  }
  0x3f   : > { %1959 = vmatpush3.bf16.msra.mxu1 %v2187_v62 }
  0x40   : > { %1927 = vmatpush3.bf16.msra.mxu0 %v602_v47  ;;  %1960 = vmatprep.subr.bf16.mxu1 %v2188_v63 }
  0x41   : > { %1928 = vmatprep.subr.bf16.mxu0 %v603_v51  ;;  %1038 = vperm.xlu0 %2179, %v980_v11  }
  0x42   : > { %1043 = vperm.xlu1 %2180, %v981_v12  }
  0x43   : > { %1961 = vmatpush3.bf16.msra.mxu1 %v2188_v63 }
  0x44   : > { %1929 = vmatpush3.bf16.msra.mxu0 %v603_v51  ;;  %2128 = vmatprep.subr.bf16.mxu1 %v2189_v49 }
  0x45   : > { %1048 = vperm.xlu0 %2179, %v982_v13   ;;  %1978 = vmatprep.subr.bf16.mxu0 %v2189_v49 }
  0x46   : > { %1053 = vperm.xlu1 %2180, %v983_v14   ;;  %v2192_v14 = vld [vmem:[%s2442_s12 + $0x18] sm:$0xff]  }
  0x47   : > { %1931 = vmatmul.mubr.bf16.vlgmr.msra.gmra.mrb[0].mxu0 %v638_v53 }
  0x48   : > { %1934 = vmatprep.mubr.bf16.mxu0 %v639_v54  ;;  %1979 = vmatpush3.bf16.msra.mxu0 %v2189_v49 }
  0x49   : > { %1058 = vperm.xlu0 %2179, %v984_v15   ;;  %1980 = vmatprep.subr.bf16.mxu0 %v2190_v43 }
  0x4a   : > { %1063 = vperm.xlu1 %2180, %v985_v16   ;;  %v2193_v16 = vld [vmem:[%s2442_s12 + $0x20] sm:$0xff]  }
  0x4c   : > { %1981 = vmatpush3.bf16.msra.mxu0 %v2190_v43 }
  0x4d   : > { %1982 = vmatprep.subr.bf16.mxu0 %v2191_v44 }
  0x4f   : > { %1935 = vmatmul.mubr.bf16.gmra.mrb[4].mxu0 %v640_v56 }
  0x50   : > { %1938 = vmatprep.mubr.bf16.mxu0 %v641_v57  ;;  %1983 = vmatpush3.bf16.msra.mxu0 %v2191_v44 }
  0x51   : > { %1984 = vmatprep.subr.bf16.mxu0 %v2192_v14 }
  0x54   : > { %1985 = vmatpush3.bf16.msra.mxu0 %v2192_v14 }
  0x55   : > { %1986 = vmatprep.subr.bf16.mxu0 %v2193_v16 }
  0x57   : > { %1939 = vmatmul.mubr.bf16.gmra.mrb[8].mxu0 %v642_v59 }
  0x58   : > { %1942 = vmatprep.mubr.bf16.mxu0 %v643_v60  ;;  %1987 = vmatpush3.bf16.msra.mxu0 %v2193_v16 }
  0x5f   : > { %1943 = vmatmul.mubr.bf16.gmra.mrb[12].mxu0 %v644_v61 }
  0xac   : > { %v2631_v12 = vpop.permute.xlu0 %988 }
  0xad   : > { %v2633_v13 = vpop.permute.xlu1 %998 }
  0xb0   : > { %v2636_v15 = vpop.permute.xlu0 %993 }
 0x11a   : > { %v1932_v19 = vpop.f32.mrb[0].mxu0 }
 0x11b   : > { %v679_v28 = vpop.f32.mrb[1].mxu0  ;;  %v744_v32 = vadd.f32 %v1932_v19, %v623_v17  ;;  %v2639_v17 = vpop.permute.xlu1 %1003  ;;  %v2194_v19 = vld [vmem:[%s2442_s12 + $0x28] sm:$0xff]  }
 0x11c   : > { %v1933_v29 = vpop.f32.mrb[2].mxu0  ;;  %v742_v35 = vadd.f32 %v679_v28, %v621_v23  ;;  %v2650_v28 = vpop.permute.xlu0 %1008  ;;  %1988 = vmatprep.subr.bf16.mxu0 %v2194_v19 }
 0x11d   : > { %v745_v33 = vadd.f32 %v1933_v29, %v624_v18  ;;  %v682_v34 = vpop.f32.mrb[3].mxu0  ;;  %v2646_v18 = vld [vmem:[%s2968_s20] ss:$0 sm:$0xff]  ;;  %1989 = vmatpush3.bf16.msra.mxu0 %v2194_v19 }
 0x11e   : > { %v743_v38 = vadd.f32 %v682_v34, %v622_v25  ;;  %v2195_v25 = vld [vmem:[%s2442_s12 + $0x30] sm:$0xff]  }
 0x11f   : > { %v795_v41 = vpack.c.bf16 %v745_v33, %v744_v32  ;;  %v2655_v34 = vpop.permute.xlu1 %1013  ;;  %1990 = vmatprep.subr.bf16.mxu0 %v2195_v25 }
 0x120   : > { %v794_v42 = vpack.c.bf16 %v743_v38, %v742_v35 }
 0x121   : > { %1991 = vmatpush3.bf16.msra.mxu0 %v2195_v25 }
 0x122   : > { %v1936_v46 = vpop.f32.mrb[4].mxu0  ;;  %1962 = vmatprep.mubr.bf16.mxu1 %v794_v42  ;;  %v2196_v42 = vld [vmem:[%s2442_s12 + $0x38] sm:$0xff]  }
 0x123   : > { %v695_v21 = vpop.f32.mrb[5].mxu0  ;;  %1963 = vmatmul.mubr.bf16.vlgmr.msra.gmra.mrb[0].mxu1 %v795_v41  ;;  %v748_v50 = vadd.f32 %v1936_v46, %v627_v45  ;;  %1992 = vmatprep.subr.bf16.mxu0 %v2196_v42 }
 0x124   : > { %v1937_v47 = vpop.f32.mrb[6].mxu0  ;;  %v746_v53 = vadd.f32 %v695_v21, %v625_v24  ;;  %2136 = vmatpush3.bf16.msra.mxu1 %v2189_v49  ;;  %v2671_v24 = vpop.permute.xlu0 %1018 }
 0x125   : > { %v749_v51 = vadd.f32 %v1937_v47, %v628_v22  ;;  %v698_v52 = vpop.f32.mrb[7].mxu0  ;;  %2129 = vmatprep.subr.bf16.mxu1 %v2190_v43  ;;  %1993 = vmatpush3.bf16.msra.mxu0 %v2196_v42 }
 0x126   : > { %v747_v54 = vadd.f32 %v698_v52, %v626_v20 }
 0x127   : > { %v797_v55 = vpack.c.bf16 %v749_v51, %v748_v50  ;;  %v2675_v50 = vpop.permute.xlu1 %1023 }
 0x128   : > { %v796_v56 = vpack.c.bf16 %v747_v54, %v746_v53  ;;  %2137 = vmatpush3.bf16.msra.mxu1 %v2190_v43 }
 0x129   : > { %2130 = vmatprep.subr.bf16.mxu1 %v2191_v44 }
 0x12a   : > { %v1940_v57 = vpop.f32.mrb[8].mxu0  ;;  %1966 = vmatprep.mubr.bf16.mxu1 %v796_v56 }
 0x12b   : > { %v711_v58 = vpop.f32.mrb[9].mxu0  ;;  %1967 = vmatmul.mubr.bf16.gmra.mrb[4].mxu1 %v797_v55  ;;  %v752_v60 = vadd.f32 %v1940_v57, %v631_v30 }
 0x12c   : > { %v1941_v59 = vpop.f32.mrb[10].mxu0  ;;  %v750_v63 = vadd.f32 %v711_v58, %v629_v26  ;;  %2138 = vmatpush3.bf16.msra.mxu1 %v2191_v44 }
 0x12d   : > { %v753_v61 = vadd.f32 %v1941_v59, %v632_v31  ;;  %v714_v62 = vpop.f32.mrb[11].mxu0  ;;  %2131 = vmatprep.subr.bf16.mxu1 %v2192_v14 }
 0x12e   : > { %v751_v0 = vadd.f32 %v714_v62, %v630_v27  ;;  %v2690_v27 = vpop.permute.xlu0 %1028 }
 0x12f   : > { %v799_v1 = vpack.c.bf16 %v753_v61, %v752_v60  ;;  %v2697_v61 = vpop.permute.xlu1 %1033 }
 0x130   : > { %v798_v2 = vpack.c.bf16 %v751_v0, %v750_v63  ;;  %2139 = vmatpush3.bf16.msra.mxu1 %v2192_v14 }
 0x131   : > { %2132 = vmatprep.subr.bf16.mxu1 %v2193_v16 }
 0x132   : > { %v1944_v3 = vpop.f32.mrb[12].mxu0  ;;  %1970 = vmatprep.mubr.bf16.mxu1 %v798_v2 }
 0x133   : > { %v727_v4 = vpop.f32.mrb[13].mxu0  ;;  %1971 = vmatmul.mubr.bf16.gmra.mrb[8].mxu1 %v799_v1  ;;  %v756_v6 = vadd.f32 %v1944_v3, %v635_v39 }
 0x134   : > { %v1945_v5 = vpop.f32.mrb[14].mxu0  ;;  %v754_v9 = vadd.f32 %v727_v4, %v633_v36  ;;  %2140 = vmatpush3.bf16.msra.mxu1 %v2193_v16  ;;  %v2706_v36 = vpop.permute.xlu0 %1038 }
 0x135   : > { %v757_v7 = vadd.f32 %v1945_v5, %v636_v40  ;;  %v730_v8 = vpop.f32.mrb[15].mxu0  ;;  %2133 = vmatprep.subr.bf16.mxu1 %v2194_v19 }
 0x136   : > { %v755_v10 = vadd.f32 %v730_v8, %v634_v37  ;;  %v2716_v8 = vpop.permute.xlu1 %1043 }
 0x137   : > { %v801_v48 = vpack.c.bf16 %v757_v7, %v756_v6 }
 0x138   : > { %v800_v11 = vpack.c.bf16 %v755_v10, %v754_v9  ;;  %2141 = vmatpush3.bf16.msra.mxu1 %v2194_v19  ;;  %v2725_v44 = vpop.permute.xlu0 %1048 }
 0x139   : > { %2134 = vmatprep.subr.bf16.mxu1 %v2195_v25 }
 0x13a   : > { %1974 = vmatprep.mubr.bf16.mxu1 %v800_v11 }
 0x13b   : > { %1975 = vmatmul.mubr.bf16.gmra.mrb[12].mxu1 %v801_v48 }
 0x13c   : > { %2142 = vmatpush3.bf16.msra.mxu1 %v2195_v25 }
 0x13d   : > { %2135 = vmatprep.subr.bf16.mxu1 %v2196_v42 }
 0x140   : > { %2143 = vmatpush3.bf16.msra.mxu1 %v2196_v42 }
 0x1f6   : > { %v1964_v23 = vpop.f32.mrb[0].mxu1 }
 0x1f7   : > { %v907_v29 = vpop.f32.mrb[1].mxu1  ;;  %v2658_v38 = vadd.f32 %v1964_v23, %v2646_v18 }
 0x1f8   : > { %v2653_v32 = vadd.f32 %v2646_v18, %v907_v29  ;;  %v1965_v33 = vpop.f32.mrb[2].mxu1  ;;  %v2732_v29 = vpop.permute.xlu1 %1053 }
 0x1f9   : > { %v910_v35 = vpop.f32.mrb[3].mxu1  ;;  %v2667_v22 = vadd.f32 %v1965_v33, %v2646_v18  ;;  %v1068_v20 = vmul.f32 %v2633_v13, %v2658_v38 }
 0x1fa   : > { %v2661_v41 = vadd.f32 %v2646_v18, %v910_v35  ;;  %v1066_v45 = vmul.f32 %v2631_v12, %v2653_v32 }
 0x1fb   : > { %v1069_v52 = vmul.f32 %v2639_v17, %v2667_v22 }
 0x1fc   : > { %v1067_v46 = vmul.f32 %v2636_v15, %v2661_v41 }
 0x1fe   : > { %v1082_v21 = vadd.f32 %v1067_v46, %v1066_v45  ;;  %v1968_v47 = vpop.f32.mrb[4].mxu1 }
 0x1ff   : > { %v923_v51 = vpop.f32.mrb[5].mxu1  ;;  %v2683_v30 = vadd.f32 %v1968_v47, %v2646_v18 }
 0x200   : > { %v1083_v53 = vadd.f32 %v1082_v21, %v1068_v20  ;;  %v2680_v54 = vadd.f32 %v2646_v18, %v923_v51  ;;  %v1969_v55 = vpop.f32.mrb[6].mxu1  ;;  %v2747_v51 = vpop.permute.xlu0 %1058 }
 0x201   : > { %v926_v56 = vpop.f32.mrb[7].mxu1  ;;  %v2693_v59 = vadd.f32 %v1969_v55, %v2646_v18  ;;  %v1072_v62 = vmul.f32 %v2671_v24, %v2683_v30  ;;  %v2751_v55 = vpop.permute.xlu1 %1063 }
 0x202   : > { %v1070_v31 = vmul.f32 %v2650_v28, %v2680_v54  ;;  %v1084_v57 = vadd.f32 %v1083_v53, %v1069_v52  ;;  %v2688_v26 = vadd.f32 %v2646_v18, %v926_v56 }
 0x203   : > { %v1073_v2 = vmul.f32 %v2675_v50, %v2693_v59 }
 0x204   : > { %v1085_v58 = vadd.f32 %v1084_v57, %v1070_v31  ;;  %v1071_v60 = vmul.f32 %v2655_v34, %v2688_v26 }
 0x206   : > { %v1086_v63 = vadd.f32 %v1085_v58, %v1071_v60  ;;  %v1972_v0 = vpop.f32.mrb[8].mxu1 }
 0x207   : > { %v939_v1 = vpop.f32.mrb[9].mxu1  ;;  %v2709_v4 = vadd.f32 %v1972_v0, %v2646_v18 }
 0x208   : > { %v1087_v39 = vadd.f32 %v1086_v63, %v1072_v62  ;;  %v2704_v40 = vadd.f32 %v2646_v18, %v939_v1  ;;  %v1973_v3 = vpop.f32.mrb[10].mxu1 }
 0x209   : > { %v942_v37 = vpop.f32.mrb[11].mxu1  ;;  %v2719_v10 = vadd.f32 %v1973_v3, %v2646_v18  ;;  %v1076_v11 = vmul.f32 %v2706_v36, %v2709_v4 }
 0x20a   : > { %v1074_v5 = vmul.f32 %v2690_v27, %v2704_v40  ;;  %v1088_v6 = vadd.f32 %v1087_v39, %v1073_v2  ;;  %v2714_v7 = vadd.f32 %v2646_v18, %v942_v37 }
 0x20b   : > { %v1077_v16 = vmul.f32 %v2716_v8, %v2719_v10 }
 0x20c   : > { %v1089_v9 = vadd.f32 %v1088_v6, %v1074_v5  ;;  %v1075_v48 = vmul.f32 %v2697_v61, %v2714_v7 }
 0x20e   : > { %v1090_v49 = vadd.f32 %v1089_v9, %v1075_v48  ;;  %v1976_v43 = vpop.f32.mrb[12].mxu1 }
 0x20f   : > { %v955_v14 = vpop.f32.mrb[13].mxu1  ;;  %v2735_v35 = vadd.f32 %v1976_v43, %v2646_v18 }
 0x210   : > { %v1091_v19 = vadd.f32 %v1090_v49, %v1076_v11  ;;  %v2730_v23 = vadd.f32 %v2646_v18, %v955_v14  ;;  %v1977_v25 = vpop.f32.mrb[14].mxu1 }
 0x211   : > { %v958_v33 = vpop.f32.mrb[15].mxu1  ;;  %v2743_v21 = vadd.f32 %v1977_v25, %v2646_v18  ;;  %v1080_v52 = vmul.f32 %v2747_v51, %v2735_v35 }
 0x212   : > { %v1078_v42 = vmul.f32 %v2725_v44, %v2730_v23  ;;  %v1092_v45 = vadd.f32 %v1091_v19, %v1077_v16  ;;  %v2740_v46 = vadd.f32 %v2646_v18, %v958_v33 }
 0x213   : > { %v1081_v56 = vmul.f32 %v2751_v55, %v2743_v21 }
 0x214   : > { %v1093_v20 = vadd.f32 %v1092_v45, %v1078_v42  ;;  %v1079_v47 = vmul.f32 %v2732_v29, %v2740_v46 }
 0x216   : > { %v1094_v53 = vadd.f32 %v1093_v20, %v1079_v47 }
 0x218   : > { %v1095_v31 = vadd.f32 %v1094_v53, %v1080_v52 }
 0x21a   : > { %v1096_v57 = vadd.f32 %v1095_v31, %v1081_v56 }
 0x21c   : > { %v1097_v58 = vrot.slane %v1096_v57, 4 }
 0x21e   : > { %v1098_v60 = vadd.f32 %v1097_v58, %v1096_v57 }
 0x220   : > { %v1099_v18 = vrot.slane %v1098_v60, 2 }
 0x222   : > { %v1100_v62 = vadd.f32 %v1099_v18, %v1098_v60 }
 0x224   : > { %v1101_v63 = vrot.slane %v1100_v62, 1 }
 0x226   : > { %v1102_v0 = vadd.f32 %v1101_v63, %v1100_v62 }
 0x228   : > { %v1103_v1 = vmul.f32 0.03125, %v1102_v0 }
 0x22a   : > { %v1104_v2 = vsub.f32 %v2653_v32, %v1103_v1  ;;  %v1105_v39 = vsub.f32 %v2661_v41, %v1103_v1  ;;  %v1106_v3 = vsub.f32 %v2658_v38, %v1103_v1  ;;  %v1107_v37 = vsub.f32 %v2667_v22, %v1103_v1 }
 0x22b   : > { %v1108_v5 = vsub.f32 %v2680_v54, %v1103_v1  ;;  %v1109_v6 = vsub.f32 %v2688_v26, %v1103_v1  ;;  %v1110_v9 = vsub.f32 %v2683_v30, %v1103_v1  ;;  %v1111_v48 = vsub.f32 %v2693_v59, %v1103_v1 }
 0x22c   : > { %v1112_v11 = vsub.f32 %v2704_v40, %v1103_v1  ;;  %v1113_v49 = vsub.f32 %v2714_v7, %v1103_v1  ;;  %v1114_v32 = vsub.f32 %v2709_v4, %v1103_v1  ;;  %v1115_v41 = vsub.f32 %v2719_v10, %v1103_v1 }
 0x22d   : > { %v1116_v38 = vsub.f32 %v2730_v23, %v1103_v1  ;;  %v1117_v22 = vsub.f32 %v2740_v46, %v1103_v1  ;;  %v1118_v54 = vsub.f32 %v2735_v35, %v1103_v1  ;;  %v1119_v26 = vsub.f32 %v2743_v21, %v1103_v1 }
 0x22e   : > { %v2772_v30 = vmul.f32 %v1104_v2, %v2631_v12  ;;  %v2775_v59 = vmul.f32 %v1105_v39, %v2636_v15  ;;  %v2778_v40 = vmul.f32 %v1106_v3, %v2633_v13  ;;  %v2785_v10 = vmul.f32 %v1107_v37, %v2639_v17 }
 0x22f   : > { %v2788_v43 = vmul.f32 %v1108_v5, %v2650_v28  ;;  %v2793_v14 = vmul.f32 %v1109_v6, %v2655_v34  ;;  %v2798_v19 = vmul.f32 %v1110_v9, %v2671_v24  ;;  %v2803_v28 = vmul.f32 %v1111_v48, %v2675_v50 }
 0x230   : > { %v1136_v4 = vmul.f32 %v2772_v30, %v2772_v30  ;;  %v1137_v7 = vmul.f32 %v2775_v59, %v2775_v59  ;;  %v1138_v12 = vmul.f32 %v2778_v40, %v2778_v40  ;;  %v1139_v13 = vmul.f32 %v2785_v10, %v2785_v10 }
 0x231   : > { %v1140_v17 = vmul.f32 %v2788_v43, %v2788_v43  ;;  %v1141_v25 = vmul.f32 %v2793_v14, %v2793_v14  ;;  %v1128_v34 = vmul.f32 %v1112_v11, %v2690_v27  ;;  %v1142_v35 = vmul.f32 %v2798_v19, %v2798_v19 }
 0x232   : > { %v1152_v15 = vadd.f32 %v1137_v7, %v1136_v4  ;;  %v1129_v24 = vmul.f32 %v1113_v49, %v2697_v61  ;;  %v1143_v45 = vmul.f32 %v2803_v28, %v2803_v28  ;;  %v1130_v20 = vmul.f32 %v1114_v32, %v2706_v36 }
 0x233   : > { %v1144_v50 = vmul.f32 %v1128_v34, %v1128_v34  ;;  %v1131_v47 = vmul.f32 %v1115_v41, %v2716_v8  ;;  %v1132_v27 = vmul.f32 %v1116_v38, %v2725_v44  ;;  %v1133_v57 = vmul.f32 %v1117_v22, %v2732_v29 }
 0x234   : > { %v1153_v16 = vadd.f32 %v1152_v15, %v1138_v12  ;;  %v1145_v52 = vmul.f32 %v1129_v24, %v1129_v24  ;;  %v1146_v56 = vmul.f32 %v1130_v20, %v1130_v20  ;;  %v1134_v60 = vmul.f32 %v1118_v54, %v2747_v51 }
 0x235   : > { %v1147_v58 = vmul.f32 %v1131_v47, %v1131_v47  ;;  %v1148_v18 = vmul.f32 %v1132_v27, %v1132_v27  ;;  %v1135_v36 = vmul.f32 %v1119_v26, %v2751_v55  ;;  %v1149_v63 = vmul.f32 %v1133_v57, %v1133_v57  ;;  %v1809_v55 = vld [vmem:[%s424_s18] ss:$0 sm:$0xff] }
 0x236   : > { %v1154_v23 = vadd.f32 %v1153_v16, %v1139_v13  ;;  %v1150_v8 = vmul.f32 %v1134_v60, %v1134_v60  ;;  %v1810_v26 = vld [vmem:[%s427_s24] ss:$0 sm:$0xff] }
 0x237   : > { %v1151_v2 = vmul.f32 %v1135_v36, %v1135_v36 }
 0x238   : > { %v1155_v33 = vadd.f32 %v1154_v23, %v1140_v17 }
 0x23a   : > { %v1156_v42 = vadd.f32 %v1155_v33, %v1141_v25 }
 0x23c   : > { %v1157_v46 = vadd.f32 %v1156_v42, %v1142_v35 }
 0x23e   : > { %v1158_v21 = vadd.f32 %v1157_v46, %v1143_v45 }
 0x240   : > { %v1159_v53 = vadd.f32 %v1158_v21, %v1144_v50 }
 0x242   : > { %v1160_v31 = vadd.f32 %v1159_v53, %v1145_v52 }
 0x244   : > { %v1161_v61 = vadd.f32 %v1160_v31, %v1146_v56 }
 0x246   : > { %v1162_v62 = vadd.f32 %v1161_v61, %v1147_v58 }
 0x248   : > { %v1163_v0 = vadd.f32 %v1162_v62, %v1148_v18 }
 0x24a   : > { %v1164_v1 = vadd.f32 %v1163_v0, %v1149_v63 }
 0x24c   : > { %v1165_v39 = vadd.f32 %v1164_v1, %v1150_v8 }
 0x24e   : > { %v1166_v44 = vadd.f32 %v1165_v39, %v1151_v2 }
 0x250   : > { %v1167_v3 = vrot.slane %v1166_v44, 4 }
 0x252   : > { %v1168_v37 = vadd.f32 %v1167_v3, %v1166_v44 }
 0x254   : > { %v1169_v29 = vrot.slane %v1168_v37, 2 }
 0x256   : > { %v1170_v5 = vadd.f32 %v1169_v29, %v1168_v37 }
 0x258   : > { %v1171_v6 = vrot.slane %v1170_v5, 1 }
 0x25a   : > { %v1172_v9 = vadd.f32 %v1171_v6, %v1170_v5 }
 0x25c   : > { %v1173_v51 = vmul.f32 0.03125, %v1172_v9 }
 0x25e   : > { %v1174_v48 = vadd.f32 1e-05, %v1173_v51 }
 0x260   : > { %2197 = vrsqrt.f32 %v1174_v48 }
 0x26a   : > { %v2198_v11 = vpop.eup %2197 }
 0x26b   : > { %v1186_v49 = vmul.f32 %v2198_v11, %v1130_v20  ;;  %v1187_v32 = vmul.f32 %v2198_v11, %v1131_v47  ;;  %v1188_v41 = vmul.f32 %v2198_v11, %v1132_v27  ;;  %v1189_v38 = vmul.f32 %v2198_v11, %v1133_v57 }
 0x26c   : > { %v1190_v22 = vmul.f32 %v2198_v11, %v1134_v60  ;;  %v1191_v54 = vmul.f32 %v2198_v11, %v1135_v36  ;;  %v1176_v4 = vmul.f32 %v2198_v11, %v2772_v30  ;;  %v1177_v7 = vmul.f32 %v2198_v11, %v2775_v59 }
 0x26d   : > { %v1209_v12 = vmul.f32 %v1809_v55, %v1186_v49  ;;  %v1212_v15 = vmul.f32 %v1809_v55, %v1189_v38  ;;  %v1184_v13 = vmul.f32 %v2198_v11, %v1128_v34  ;;  %v1185_v23 = vmul.f32 %v2198_v11, %v1129_v24 }
 0x26e   : > { %v1199_v16 = vmul.f32 %v1809_v55, %v1176_v4  ;;  %v1200_v17 = vmul.f32 %v1809_v55, %v1177_v7  ;;  %v1178_v25 = vmul.f32 %v2198_v11, %v2778_v40  ;;  %v1210_v33 = vmul.f32 %v1809_v55, %v1187_v32 }
 0x26f   : > { %v1235_v35 = vadd.f32 %v1810_v26, %v1212_v15  ;;  %v1207_v42 = vmul.f32 %v1809_v55, %v1184_v13  ;;  %v1179_v45 = vmul.f32 %v2198_v11, %v2785_v10  ;;  %v1208_v50 = vmul.f32 %v1809_v55, %v1185_v23 }
 0x270   : > { %v1222_v46 = vadd.f32 %v1810_v26, %v1199_v16  ;;  %v1223_v20 = vadd.f32 %v1810_v26, %v1200_v17  ;;  %v1201_v21 = vmul.f32 %v1809_v55, %v1178_v25  ;;  %v1232_v47 = vadd.f32 %v1810_v26, %v1209_v12  ;;  %v1811_v12 = vld [vmem:[%s435_s30] ss:$0 sm:$0xff] }
 0x271   : > { %2199 = vtanh.f32 %v1235_v35  ;;  %v1230_v30 = vadd.f32 %v1810_v26, %v1207_v42  ;;  %v1202_v59 = vmul.f32 %v1809_v55, %v1179_v45  ;;  %v1231_v34 = vadd.f32 %v1810_v26, %v1208_v50 }
 0x272   : > { %2201 = vtanh.f32 %v1222_v46  ;;  %v1224_v52 = vadd.f32 %v1810_v26, %v1201_v21  ;;  %v1180_v24 = vmul.f32 %v2198_v11, %v2788_v43  ;;  %v1181_v53 = vmul.f32 %v2198_v11, %v2793_v14 }
 0x273   : > { %2203 = vtanh.f32 %v1223_v20  ;;  %v1225_v40 = vadd.f32 %v1810_v26, %v1202_v59  ;;  %v1211_v27 = vmul.f32 %v1809_v55, %v1188_v41  ;;  %v1182_v56 = vmul.f32 %v2198_v11, %v2798_v19 }
 0x274   : > { %2205 = vtanh.f32 %v1230_v30  ;;  %v1203_v10 = vmul.f32 %v1809_v55, %v1180_v24  ;;  %v1183_v31 = vmul.f32 %v2198_v11, %v2803_v28  ;;  %v1233_v57 = vadd.f32 %v1810_v26, %v1210_v33 }
 0x275   : > { %2207 = vtanh.f32 %v1231_v34  ;;  %v1204_v58 = vmul.f32 %v1809_v55, %v1181_v53  ;;  %v1205_v60 = vmul.f32 %v1809_v55, %v1182_v56  ;;  %v1213_v62 = vmul.f32 %v1809_v55, %v1190_v22 }
 0x276   : > { %2209 = vtanh.f32 %v1224_v52  ;;  %v1226_v61 = vadd.f32 %v1810_v26, %v1203_v10  ;;  %v1206_v18 = vmul.f32 %v1809_v55, %v1183_v31  ;;  %v1234_v36 = vadd.f32 %v1810_v26, %v1211_v27 }
 0x277   : > { %2211 = vtanh.f32 %v1225_v40  ;;  %v1227_v43 = vadd.f32 %v1810_v26, %v1204_v58  ;;  %v1214_v14 = vmul.f32 %v1809_v55, %v1191_v54  ;;  %v1228_v63 = vadd.f32 %v1810_v26, %v1205_v60 }
 0x278   : > { %2213 = vtanh.f32 %v1232_v47  ;;  %v1229_v0 = vadd.f32 %v1810_v26, %v1206_v18  ;;  %v1236_v28 = vadd.f32 %v1810_v26, %v1213_v62 }
 0x279   : > { %2215 = vtanh.f32 %v1233_v57  ;;  %v1237_v1 = vadd.f32 %v1810_v26, %v1214_v14 }
 0x27a   : > { %2217 = vtanh.f32 %v1226_v61 }
 0x27b   : > { %v2200_v19 = vpop.eup %2199  ;;  %2219 = vtanh.f32 %v1227_v43 }
 0x27c   : > { %v2202_v8 = vpop.eup %2201  ;;  %2221 = vtanh.f32 %v1234_v36 }
 0x27d   : > { %v2204_v2 = vpop.eup %2203  ;;  %2223 = vtanh.f32 %v1228_v63 }
 0x27e   : > { %v2206_v39 = vpop.eup %2205  ;;  %v1254_v44 = vpack.c.bf16 %v2204_v2, %v2202_v8  ;;  %2225 = vtanh.f32 %v1229_v0 }
 0x27f   : > { %v2208_v3 = vpop.eup %2207  ;;  %2227 = vtanh.f32 %v1236_v28 }
 0x280   : > { %v2210_v37 = vpop.eup %2209  ;;  %1994 = vmatprep.mubr.bf16.mxu0 %v1254_v44  ;;  %v1258_v29 = vpack.c.bf16 %v2208_v3, %v2206_v39  ;;  %2229 = vtanh.f32 %v1237_v1 }
 0x281   : > { %v2212_v5 = vpop.eup %2211 }
 0x282   : > { %v2214_v6 = vpop.eup %2213  ;;  %2002 = vmatprep.mubr.bf16.mxu1 %v1258_v29  ;;  %v1255_v9 = vpack.c.bf16 %v2212_v5, %v2210_v37 }
 0x283   : > { %v2216_v51 = vpop.eup %2215 }
 0x284   : > { %v2218_v48 = vpop.eup %2217  ;;  %1995 = vmatmul.mubr.bf16.vlgmr.msra.gmra.mrb[16].mxu0 %v1255_v9  ;;  %v1259_v11 = vpack.c.bf16 %v2216_v51, %v2214_v6 }
 0x285   : > { %v2220_v55 = vpop.eup %2219 }
 0x286   : > { %v2222_v49 = vpop.eup %2221  ;;  %2003 = vmatmul.mubr.bf16.vlgmr.msra.gmra.mrb[16].mxu1 %v1259_v11  ;;  %v1256_v32 = vpack.c.bf16 %v2220_v55, %v2218_v48  ;;  %v2326_v48 = vmov (!%p1820_p6), 0.0|0.0  }
 0x287   : > { %v2224_v41 = vpop.eup %2223  ;;  %v1260_v38 = vpack.c.bf16 %v2200_v19, %v2222_v49  ;;  %2080 = vmatprep.subr.bf16.mxu0 (!%p1820_p6), %v2326_v48  ;;  %v2328_v49 = vmov (!%p1820_p6), 0.0   ;;  %2104 = vmatprep.subr.bf16.mxu1 (!%p1820_p6), %v2326_v48 }
 0x288   : > { %v2226_v22 = vpop.eup %2225  ;;  %1998 = vmatprep.mubr.bf16.mxu0 %v1256_v32 }
 0x289   : > { %v2228_v54 = vpop.eup %2227  ;;  %2006 = vmatprep.mubr.bf16.mxu1 %v1260_v38  ;;  %v1257_v26 = vpack.c.bf16 %v2226_v22, %v2224_v41  ;;  %v1553_v22 = vld [vmem:[%s2959_s9] sm:$0xff] (!%p1820_p6) }
 0x28a   : > { %v2230_v4 = vpop.eup %2229 }
 0x28b   : > { %v1261_v7 = vpack.c.bf16 %v2230_v4, %v2228_v54  ;;  %v1554_v54 = vld [vmem:[%s2959_s9 + $0x8] sm:$0xff] (!%p1820_p6)  ;;  %v1556_v4 = vld [vmem:[%s2959_s9 + $0x18] sm:$0xff] (!%p1820_p6) }
 0x28c   : > { %1999 = vmatmul.mubr.bf16.gmra.mrb[20].mxu0 %v1257_v26  ;;  %v1555_v26 = vld [vmem:[%s2959_s9 + $0x10] sm:$0xff] (!%p1820_p6) }
 0x28d   : > { %2042 = vmatprep.mubr.msk.f32.mxu0 (!%p1820_p6), %vm2327_vm0, %v2328_v49 }
 0x28e   : > { %2007 = vmatmul.mubr.bf16.gmra.mrb[20].mxu1 %v1261_v7 }
 0x28f   : > { %2077 = vmatprep.mubr.msk.f32.mxu1 (!%p1820_p6), %vm2327_vm0, %v2328_v49 }
 0x357   : > { %v1996_v15 = vpop.f32.mrb[16].mxu0 }
 0x358   : > { %v1376_v13 = vadd.f32 %v1996_v15, %v1811_v12  ;;  %v1367_v16 = vpop.f32.mrb[17].mxu0 }
 0x359   : > { %v2004_v17 = vpop.f32.mrb[16].mxu1  ;;  %v1368_v23 = vadd.f32 %v1811_v12, %v1367_v16  ;;  %v1997_v25 = vpop.f32.mrb[18].mxu0  ;;  %v2108_v16 = vpack.c.bf16 (!%p1820_p6), %v1556_v4, %v1555_v26 }
 0x35a   : > { %2231 = vtanh.f32 %v1376_v13  ;;  %v1408_v33 = vadd.f32 %v2004_v17, %v1811_v12  ;;  %v1399_v35 = vpop.f32.mrb[17].mxu1  ;;  %v1379_v42 = vadd.f32 %v1997_v25, %v1811_v12  ;;  %v1370_v45 = vpop.f32.mrb[19].mxu0  ;;  %v1557_v17 = vld [vmem:[%s2959_s9 + $0x20] sm:$0xff] (!%p1820_p6) }
 0x35b   : > { %2233 = vtanh.f32 %v1368_v23  ;;  %v1400_v46 = vadd.f32 %v1811_v12, %v1399_v35  ;;  %v2005_v20 = vpop.f32.mrb[18].mxu1  ;;  %v1371_v21 = vadd.f32 %v1811_v12, %v1370_v45  ;;  %v1558_v23 = vld [vmem:[%s2959_s9 + $0x28] sm:$0xff] (!%p1820_p6)  ;;  %v1559_v45 = vld [vmem:[%s2959_s9 + $0x30] sm:$0xff] (!%p1820_p6) }
 0x35c   : > { %2235 = vtanh.f32 %v1408_v33  ;;  %v1411_v50 = vadd.f32 %v2005_v20, %v1811_v12  ;;  %v1402_v30 = vpop.f32.mrb[19].mxu1 }
 0x35d   : > { %2237 = vtanh.f32 %v1400_v46  ;;  %v1403_v59 = vadd.f32 %v1811_v12, %v1402_v30  ;;  %v1560_v46 = vld [vmem:[%s2959_s9 + $0x38] sm:$0xff] (!%p1820_p6) }
 0x35e   : > { %2239 = vtanh.f32 %v1379_v42  ;;  %v2111_v42 = vpack.c.bf16 (!%p1820_p6), %v1558_v23, %v1557_v17  ;;  %v2114_v30 = vpack.c.bf16 (!%p1820_p6), %v1560_v46, %v1559_v45 }
 0x35f   : > { %2241 = vtanh.f32 %v1411_v50  ;;  %v2000_v47 = vpop.f32.mrb[20].mxu0 }
 0x360   : > { %2243 = vtanh.f32 %v1371_v21  ;;  %v1392_v34 = vadd.f32 %v2000_v47, %v1811_v12  ;;  %v1383_v52 = vpop.f32.mrb[21].mxu0  ;;  %v1562_v47 = vld [vmem:[%s2959_s9 + $0x48] sm:$0xff] (!%p1820_p6) }
 0x361   : > { %2245 = vtanh.f32 %v1403_v59  ;;  %v2008_v24 = vpop.f32.mrb[20].mxu1  ;;  %v1384_v40 = vadd.f32 %v1811_v12, %v1383_v52  ;;  %v2001_v53 = vpop.f32.mrb[22].mxu0  ;;  %v1561_v59 = vld [vmem:[%s2959_s9 + $0x40] sm:$0xff] (!%p1820_p6) }
 0x362   : > { %2247 = vtanh.f32 %v1392_v34  ;;  %v1424_v27 = vadd.f32 %v2008_v24, %v1811_v12  ;;  %v1415_v10 = vpop.f32.mrb[21].mxu1  ;;  %v1395_v56 = vadd.f32 %v2001_v53, %v1811_v12  ;;  %v1386_v31 = vpop.f32.mrb[23].mxu0  ;;  %v1563_v53 = vld [vmem:[%s2959_s9 + $0x50] sm:$0xff] (!%p1820_p6) }
 0x363   : > { %2249 = vtanh.f32 %v1384_v40  ;;  %v1416_v57 = vadd.f32 %v1811_v12, %v1415_v10  ;;  %v2009_v58 = vpop.f32.mrb[22].mxu1  ;;  %v1387_v18 = vadd.f32 %v1811_v12, %v1386_v31  ;;  %v2117_v40 = vpack.c.bf16 (!%p1820_p6), %v1562_v47, %v1561_v59 }
 0x364   : > { %v2232_v61 = vpop.eup %2231  ;;  %2251 = vtanh.f32 %v1424_v27  ;;  %v1427_v60 = vadd.f32 %v2009_v58, %v1811_v12  ;;  %v1418_v43 = vpop.f32.mrb[23].mxu1  ;;  %v1564_v27 = vld [vmem:[%s2959_s9 + $0x58] sm:$0xff] (!%p1820_p6)  ;;  %v1565_v58 = vld [vmem:[%s2959_s9 + $0x60] sm:$0xff] (!%p1820_p6) }
 0x365   : > { %v2234_v62 = vpop.eup %2233  ;;  %1448 = vst [vmem:[#allocation2 + $0x10] sm:$0xff] %v2232_v61  ;;  %2253 = vtanh.f32 %v1416_v57  ;;  %v1419_v36 = vadd.f32 %v1811_v12, %v1418_v43  ;;  %v2105_v12 = vpack.c.bf16 (!%p1820_p6), %v1554_v54, %v1553_v22  ;;  %v2120_v57 = vpack.c.bf16 (!%p1820_p6), %v1564_v27, %v1563_v53  ;;  %v1566_v61 = vld [vmem:[%s2959_s9 + $0x68] sm:$0xff] (!%p1820_p6)  ;;  %v1567_v43 = vld [vmem:[%s2959_s9 + $0x70] sm:$0xff] (!%p1820_p6) }
 0x366   : > { %v2236_v14 = vpop.eup %2235  ;;  %1446 = vst [vmem:[#allocation2] sm:$0xff] %v2234_v62  ;;  %2255 = vtanh.f32 %v1395_v56  ;;  %v1568_v62 = vld [vmem:[%s2959_s9 + $0x78] sm:$0xff] (!%p1820_p6) }
 0x367   : > { %v2238_v63 = vpop.eup %2237  ;;  %1456 = vst [vmem:[#allocation2 + $0x50] sm:$0xff] %v2236_v14  ;;  %2257 = vtanh.f32 %v1427_v60  ;;  %2106 = vmatpush3.bf16.msra.mxu1 (!%p1820_p6), %v2105_v12  ;;  %v2126_v14 = vpack.c.bf16 (!%p1820_p6), %v1568_v62, %v1567_v43 }
 0x368   : > { %v2240_v0 = vpop.eup %2239  ;;  %1454 = vst [vmem:[#allocation2 + $0x40] sm:$0xff] %v2238_v63  ;;  %2259 = vtanh.f32 %v1387_v18  ;;  %2107 = vmatprep.subr.bf16.mxu1 (!%p1820_p6), %v2326_v48  ;;  %v2123_v18 = vpack.c.bf16 (!%p1820_p6), %v1566_v61, %v1565_v58 }
 0x369   : > { %v2242_v19 = vpop.eup %2241  ;;  %1449 = vst [vmem:[#allocation2 + $0x18] sm:$0xff] %v2240_v0  ;;  %2261 = vtanh.f32 %v1419_v36  ;;  %v1466_v36 = vld [vmem:[%s2958_s8] sm:$0x3] (!%p1820_p6) }
 0x36a   : > { %v2244_v28 = vpop.eup %2243  ;;  %1457 = vst [vmem:[#allocation2 + $0x58] sm:$0xff] %v2242_v19  ;;  %v1821_v19 = vld [vmem:[%s2960_s10] ss:$0 sm:$0xff] (!%p1820_p6) }
 0x36b   : > { %v2246_v8 = vpop.eup %2245  ;;  %1447 = vst [vmem:[#allocation2 + $0x8] sm:$0xff] %v2244_v28  ;;  %2109 = vmatpush3.bf16.msra.mxu1 (!%p1820_p6), %v2108_v16 }
 0x36c   : > { %v2248_v1 = vpop.eup %2247  ;;  %1455 = vst [vmem:[#allocation2 + $0x48] sm:$0xff] %v2246_v8  ;;  %v1469_v51 = vld [vmem:[#allocation2 + $0x10] sm:$0xff] (!%p1820_p6)  ;;  %2110 = vmatprep.subr.bf16.mxu1 (!%p1820_p6), %v2326_v48 }
 0x36d   : > { %v2250_v2 = vpop.eup %2249  ;;  %1452 = vst [vmem:[#allocation2 + $0x30] sm:$0xff] %v2248_v1  ;;  %v1467_v6 = vld [vmem:[#allocation2] sm:$0xff] (!%p1820_p6) }
 0x36e   : > { %v2252_v39 = vpop.eup %2251  ;;  %1450 = vst [vmem:[#allocation2 + $0x20] sm:$0xff] %v2250_v2  ;;  %1465 = sbr.rel (%p1820_p6) target bundleno = 1369 (0x559), region = 140  ;;  %v1477_v50 = vld [vmem:[#allocation2 + $0x50] sm:$0xff] (!%p1820_p6) }
 0x36f   : > { %v2254_v44 = vpop.eup %2253  ;;  %1460 = vst [vmem:[#allocation2 + $0x70] sm:$0xff] %v2252_v39  ;;  %v1475_v33 = vld [vmem:[#allocation2 + $0x40] sm:$0xff] (!%p1820_p6)  ;;  %2112 = vmatpush3.bf16.msra.mxu1 (!%p1820_p6), %v2111_v42 }
 0x370   : > { %v2256_v3 = vpop.eup %2255  ;;  %1458 = vst [vmem:[#allocation2 + $0x60] sm:$0xff] %v2254_v44  ;;  %v1470_v55 = vld [vmem:[#allocation2 + $0x18] sm:$0xff] (!%p1820_p6)  ;;  %2113 = vmatprep.subr.bf16.mxu1 (!%p1820_p6), %v2326_v48 }
 0x371   : > { %v2258_v37 = vpop.eup %2257  ;;  %1453 = vst [vmem:[#allocation2 + $0x38] sm:$0xff] %v2256_v3  ;;  %v2084_v32 = vpack.c.bf16 (!%p1820_p6), %v1470_v55, %v1469_v51  ;;  %v1478_v21 = vld [vmem:[#allocation2 + $0x58] sm:$0xff] (!%p1820_p6) }
 0x372   : > { %v2260_v29 = vpop.eup %2259  ;;  %1461 = vst [vmem:[#allocation2 + $0x78] sm:$0xff] %v2258_v37  ;;  %v1468_v9 = vld [vmem:[#allocation2 + $0x8] sm:$0xff] (!%p1820_p6)  ;;  %v2096_v34 = vpack.c.bf16 (!%p1820_p6), %v1478_v21, %v1477_v50 }
 0x373   : > { %v2262_v5 = vpop.eup %2261  ;;  %1451 = vst [vmem:[#allocation2 + $0x28] sm:$0xff] %v2260_v29  ;;  %v2081_v11 = vpack.c.bf16 (!%p1820_p6), %v1468_v9, %v1467_v6  ;;  %v1476_v35 = vld [vmem:[#allocation2 + $0x48] sm:$0xff] (!%p1820_p6)  ;;  %2115 = vmatpush3.bf16.msra.mxu1 (!%p1820_p6), %v2114_v30 }
 0x374   : > { %1459 = vst [vmem:[#allocation2 + $0x68] sm:$0xff] %v2262_v5  ;;  %v1473_v15 = vld [vmem:[#allocation2 + $0x30] sm:$0xff] (!%p1820_p6)  ;;  %v2093_v20 = vpack.c.bf16 (!%p1820_p6), %v1476_v35, %v1475_v33  ;;  %2116 = vmatprep.subr.bf16.mxu1 (!%p1820_p6), %v2326_v48 }
 0x375   : > { %2082 = vmatpush3.bf16.msra.mxu0 %v2081_v11  ;;  %v1471_v41 = vld [vmem:[#allocation2 + $0x20] sm:$0xff] }
 0x376   : > { %2083 = vmatprep.subr.bf16.mxu0 %v2326_v48  ;;  %v1481_v56 = vld [vmem:[#allocation2 + $0x70] sm:$0xff] }
 0x377   : > { %v1479_v52 = vld [vmem:[#allocation2 + $0x60] sm:$0xff]  ;;  %2118 = vmatpush3.bf16.msra.mxu1 %v2117_v40 }
 0x378   : > { %v1474_v13 = vld [vmem:[#allocation2 + $0x38] sm:$0xff]  ;;  %2119 = vmatprep.subr.bf16.mxu1 %v2326_v48 }
 0x379   : > { %2085 = vmatpush3.bf16.msra.mxu0 %v2084_v32  ;;  %v2090_v25 = vpack.c.bf16 %v1474_v13, %v1473_v15  ;;  %v1482_v31 = vld [vmem:[#allocation2 + $0x78] sm:$0xff] }
 0x37a   : > { %v1472_v38 = vld [vmem:[#allocation2 + $0x28] sm:$0xff]  ;;  %2086 = vmatprep.subr.bf16.mxu0 %v2326_v48  ;;  %v2102_v60 = vpack.c.bf16 %v1482_v31, %v1481_v56 }
 0x37b   : > { %v2087_v7 = vpack.c.bf16 %v1472_v38, %v1471_v41  ;;  %v1480_v24 = vld [vmem:[#allocation2 + $0x68] sm:$0xff]  ;;  %2121 = vmatpush3.bf16.msra.mxu1 %v2120_v57 }
 0x37c   : > { %v2099_v10 = vpack.c.bf16 %v1480_v24, %v1479_v52  ;;  %2122 = vmatprep.subr.bf16.mxu1 %v2326_v48 }
 0x37d   : > { %2088 = vmatpush3.bf16.msra.mxu0 %v2087_v7 }
 0x37e   : > { %2089 = vmatprep.subr.bf16.mxu0 %v2326_v48 }
 0x37f   : > { %2124 = vmatpush3.bf16.msra.mxu1 %v2123_v18 }
 0x380   : > { %2125 = vmatprep.subr.bf16.mxu1 %v2326_v48 }
 0x381   : > { %2091 = vmatpush3.bf16.msra.mxu0 %v2090_v25 }
 0x382   : > { %2092 = vmatprep.subr.bf16.mxu0 %v2326_v48 }
 0x383   : > { %2127 = vmatpush3.bf16.msra.mxu1 %v2126_v14 }
 0x385   : > { %2094 = vmatpush3.bf16.msra.mxu0 %v2093_v20 }
 0x386   : > { %2095 = vmatprep.subr.bf16.mxu0 %v2326_v48 }
 0x389   : > { %2097 = vmatpush3.bf16.msra.mxu0 %v2096_v34 }
 0x38a   : > { %2098 = vmatprep.subr.bf16.mxu0 %v2326_v48 }
 0x38d   : > { %2100 = vmatpush3.bf16.msra.mxu0 %v2099_v10 }
 0x38e   : > { %2101 = vmatprep.subr.bf16.mxu0 %v2326_v48 }
 0x391   : > { %2103 = vmatpush3.bf16.msra.mxu0 %v2102_v60 }
 0x394   : > { %2043 = vmatmul.mubr.f32.vlgmr.msra.gmra.mrb[0].mxu0 %v1466_v36 }
 0x467   : > { %v1549_v63 = vpop.f32.mrb[0].mxu0 }
 0x468   : > { %v2044_v0 = vpop.f32.mrb[1].mxu0  ;;  %2078 = vmatmul.mubr.f32.vlgmr.msra.gmra.mrb[0].mxu1 %v1549_v63 }
 0x53b   : > { %v1642_v28 = vpop.f32.mrb[0].mxu1 }
 0x53c   : > { %v1643_v8 = vadd.f32 %v1821_v19, %v1642_v28  ;;  %v2079_v1 = vpop.f32.mrb[1].mxu1 }
 0x53e   : > { %v1822_v2 = vmul.f32 -1.442695, %v1643_v8 }
 0x540   : > { %2263 = vpow2.f32 %v1822_v2 }
 0x54a   : > { %v2264_v39 = vpop.eup %2263 }
 0x54b   : > { %v1649_v44 = vadd.f32 1.0, %v2264_v39 }
 0x54d   : > { %2265 = vrcp.f32 %v1649_v44 }
 0x557   : > { %v2266_v3 = vpop.eup %2265 }
 0x558   : > { %1652 = vst [vmem:[#allocation6] sm:$0x3] %v2266_v3 }
 0x559 PF: > { %s2969_s21 = sadd.s32 4294967295, %s2323_s23   ;;  %s2329_s30 = smov [#allocation6]  }
 0x55a   : > { %p2915_p7 = scmp.eq.s32.totalorder %s2969_s21, 2  ;;  %s1660_s28 = sshll.u32 %s2329_s30, 4  ;;  %s1661_s28 = int_to_ptr.vmem [resolvable:$true] %s1660_s28 }
 0x55b   : > { %s2267_s29 = scalar_lea.vmem %s1661_s28, 32  ;;  %p2274_p11 = scmp.lt.s32.totalorder %s1661_s28, %s1661_s28 }
 0x55c   : > { %p2268_p8 = scmp.ne.s32.totalorder %s1661_s28, %s2267_s29  ;;  %p2275_p12 = scmp.lt.s32.totalorder %s2267_s29, %s2267_s29 }
 0x55e   : > { %p2269_p9 = pnand %p2268_p8, %p2915_p7  ;;  %p2276_p13 = por %p2275_p12, %p2274_p11 }
 0x560   : > { %p2270_p10 = pneg %p2269_p9 }
 0x562   : > { %p2277_p0 = pnand %p2276_p13, %p2270_p10 }
 0x564   : > { %2280 = shalt.err (!%p2277_p0)
}
 0x565   : > { %s2971_s15 = sld [smem:[#allocation15_spill]] }
 0x56b   : > { %s2281_s16 = scalar_lea.hbm %s2971_s15, 32 }
 0x56c   : > { %p2282_p1 = scmp.ne.s32.totalorder %s2971_s15, %s2281_s16  ;;  %p2287_p4 = scmp.lt.u32.totalorder %s2281_s16, %s2971_s15 }
 0x56e   : > { %p2283_p2 = pnand %p2282_p1, %p2915_p7 }
 0x570   : > { %p2284_p3 = pneg %p2283_p2 }
 0x572   : > { %p2289_p5 = pnand %p2287_p4, %p2284_p3 }
 0x574   : > { %2292 = shalt.err (!%p2289_p5)
}
 0x575   : > { %2145 = dma.vmem_to_hbm [thread:$0]  (%p2915_p7), %s1661_s28, 32, %s2971_s15, [#allocation7]  }
 0x576   : > { %2310 = dma.done.wait (%p2915_p7), [#allocation7], 32  }
 0x577   : > { %2312 = vsyncadd (%p2915_p7), [#allocation7], 4294967264 }
 0x578 PF: > { %s23_s23 = sadd.s32 1, %s2323_s23   ;;  %s2972_s21 = sld [smem:[#allocation13_spill]] }
 0x579   : > { %p20_p6 = scmp.ge.s32.totalorder %s23_s23, 5   ;;  %s2973_s22 = sld [smem:[#allocation14_spill]] }
 0x57b   :  { %22 = sbr.rel (!%p20_p6) target bundleno = 4 (0x4), region = 203 }
 0x582   :  { %1673 = vsyncpa [#allocation7], 1 }
 0x583   :  { %1675 = vsyncpa [#allocation7 + $0x1], 1 }
 0x584   :  { %1676 = vsyncmov [#allocation4] }
 0x587   :  { %s1677_s27 = vpop.sfrf %1676 }
 0x588   :  { %p1827_p8 = scmp.ne.s32.totalorder %s1677_s27, 0 }
 0x58a   :  { %1681 = shalt.err (%p1827_p8)  }
 0x58b   :  { %1683 = vsyncmov [#allocation4 + $0x1] }
 0x58e   :  { %s1684_s24 = vpop.sfrf %1683 }
 0x58f   :  { %p1828_p7 = scmp.ne.s32.totalorder %s1684_s24, 0 }
 0x591   :  { %1688 = shalt.err (%p1828_p7)  }

</bundles_post_ra>
